<compile_context>
chip_gen: v7x
topology: tpu7x:2x2x1
jax: 0.10.0
libtpu: 0.0.40
codegen_flags: <defaults>
</compile_context>

<pallas_src>
import math
import numpy as np

import jax
import jax.numpy as jnp
from jax import lax
from jax.experimental import pallas as pl
from jax.experimental.pallas import tpu as pltpu


def _round_up(v, m):
    return ((v + m - 1) // m) * m


# ---------------------------------------------------------------------------
# Pallas kernel: all-mode complex channel mixing as two block-diagonal real
# matmuls over one lane-dense tile of the flattened spatial dim.
#   x_full = [xr ; xi]            (2*M*I, TN) bf16   (stacked in VMEM)
#   o_re   = W_top @ x_full       (M*O,  TN)  bf16   (f32 accumulate)
#   o_im   = W_bot @ x_full       (M*O,  TN)  bf16
# ---------------------------------------------------------------------------
def _complex_mix_kernel(w_top_ref, w_bot_ref, xr_ref, xi_ref, o_re_ref, o_im_ref):
    x_full = jnp.concatenate([xr_ref[...], xi_ref[...]], axis=0)   # (2MI, TN) bf16
    o_re_ref[...] = jnp.dot(
        w_top_ref[...], x_full, preferred_element_type=jnp.float32
    ).astype(o_re_ref.dtype)
    o_im_ref[...] = jnp.dot(
        w_bot_ref[...], x_full, preferred_element_type=jnp.float32
    ).astype(o_im_ref.dtype)


def _mix_pallas(w_top, w_bot, xr, xi):
    """w_top/w_bot: (M*O, 2*M*I) bf16; xr/xi: (M*I, N) bf16 -> two (M*O, N) bf16."""
    MO, K2 = w_top.shape
    MI, N = xr.shape

    # Lane tile: as large as useful (amortizes per-step grid overhead), but at
    # least two tiles when N allows it so v7x's two TensorCores both get work.
    TN_CAP = 8192
    if N <= 256:
        TN = _round_up(N, 128)
    else:
        TN = min(TN_CAP, _round_up(pl.cdiv(N, 2), 128))
    grid = (pl.cdiv(N, TN),)

    return pl.pallas_call(
        _complex_mix_kernel,
        out_shape=(
            jax.ShapeDtypeStruct((MO, N), jnp.bfloat16),
            jax.ShapeDtypeStruct((MO, N), jnp.bfloat16),
        ),
        grid_spec=pltpu.PrefetchScalarGridSpec(
            num_scalar_prefetch=0,
            grid=grid,
            in_specs=[
                # Packed block-diagonal weights: one untiled block each,
                # loaded once and resident in VMEM across the whole grid.
                pl.BlockSpec((MO, K2), lambda n: (0, 0)),
                pl.BlockSpec((MO, K2), lambda n: (0, 0)),
                # Activation tiles: flattened B*spatial dim in the lane dim.
                pl.BlockSpec((MI, TN), lambda n: (0, n)),
                pl.BlockSpec((MI, TN), lambda n: (0, n)),
            ],
            out_specs=(
                pl.BlockSpec((MO, TN), lambda n: (0, n)),
                pl.BlockSpec((MO, TN), lambda n: (0, n)),
            ),
        ),
        compiler_params=pltpu.CompilerParams(
            dimension_semantics=("parallel",),
            vmem_limit_bytes=32 * 1024 * 1024,
        ),
    )(w_top, w_bot, xr, xi)


# ---------------------------------------------------------------------------
# One FFNO factorized spectral branch (rfft along `axis`, mix low modes, irfft)
# ---------------------------------------------------------------------------
def _pack_weight_blockdiag(weight):
    """weight: (I, O, M, 2) f32 -> (W_top, W_bot), each (M*O, 2*M*I) bf16.

    Row r = m*O + o produces the real (W_top) / imag (W_bot) part of output
    channel o at mode m.  Columns are ordered [all real inputs (mode-major,
    M*I cols), then all imag inputs (M*I cols)], matching the stacked [xr; xi].
    """
    I, O, M, _ = weight.shape
    wr = jnp.transpose(weight[..., 0], (2, 1, 0))            # (M, O, I)
    wi = jnp.transpose(weight[..., 1], (2, 1, 0))            # (M, O, I)
    eye = jnp.eye(M, dtype=weight.dtype)
    wr_bd = jnp.einsum("mn,moi->moni", eye, wr).reshape(M * O, M * I)
    wi_bd = jnp.einsum("mn,moi->moni", eye, wi).reshape(M * O, M * I)
    w_top = jnp.concatenate([wr_bd, -wi_bd], axis=1).astype(jnp.bfloat16)
    w_bot = jnp.concatenate([wi_bd, wr_bd], axis=1).astype(jnp.bfloat16)
    return w_top, w_bot


def _apply_axis(x, weight, axis):
    """x: (B, I, S1, S2, S3) f32; weight: (I, O, modes, 2) f32."""
    I, O, modes, _ = weight.shape
    n = x.shape[axis]

    xf = jnp.fft.rfft(x, axis=axis, norm="ortho")                    # complex64
    xf_low = lax.slice_in_dim(xf, 0, modes, axis=axis)

    # Single transpose of the (small) low-mode tensor: -> (modes, I, B, sA, sB)
    xm = jnp.moveaxis(xf_low, (axis, 1), (0, 1))
    rest_shape = xm.shape[2:]
    N = int(np.prod(rest_shape))
    xm = xm.reshape(modes * I, N)

    # Real/imag passed separately (no packed concat materialized in HBM).
    xr = jnp.real(xm).astype(jnp.bfloat16)                           # (M*I, N)
    xi = jnp.imag(xm).astype(jnp.bfloat16)                           # (M*I, N)

    w_top, w_bot = _pack_weight_blockdiag(weight)                    # (M*O, 2*M*I)

    o_re, o_im = _mix_pallas(w_top, w_bot, xr, xi)                   # (M*O, N) bf16

    out_c = lax.complex(o_re.astype(jnp.float32), o_im.astype(jnp.float32))
    out_c = out_c.reshape((modes, O) + rest_shape)                   # (M, O, B, sA, sB)
    out_low = jnp.moveaxis(out_c, (0, 1), (axis, 1))                 # (B, O, ..., modes@axis)

    full_modes = n // 2 + 1
    pad_widths = [(0, 0)] * 5
    pad_widths[axis] = (0, full_modes - modes)
    out_ft = jnp.pad(out_low, pad_widths)

    return jnp.fft.irfft(out_ft, n=n, axis=axis, norm="ortho")


@jax.jit
def spectral_conv3d(x, weights):
    """weights = [w_x, w_y, w_z], each (I, O, modes, 2)."""
    xz = _apply_axis(x, weights[2], axis=4)
    xy = _apply_axis(x, weights[1], axis=3)
    xx = _apply_axis(x, weights[0], axis=2)
    return xx + xy + xz


# ---------------------------------------------------------------------------
# Pure-JAX reference (mirrors the PyTorch einsums) for a correctness check
# ---------------------------------------------------------------------------
def _ref_axis(x, weight, axis):
    I, O, modes, _ = weight.shape
    n = x.shape[axis]
    letters = {2: "x", 3: "y", 4: "z"}[axis]
    xf = jnp.fft.rfft(x, axis=axis, norm="ortho")
    xf_low = lax.slice_in_dim(xf, 0, modes, axis=axis)
    wc = weight[..., 0] + 1j * weight[..., 1]
    out_low = jnp.einsum(f"bixyz,io{letters}->boxyz", xf_low, wc)
    full_modes = n // 2 + 1
    pad_widths = [(0, 0)] * 5
    pad_widths[axis] = (0, full_modes - modes)
    out_ft = jnp.pad(out_low, pad_widths)
    return jnp.fft.irfft(out_ft, n=n, axis=axis, norm="ortho")


def spectral_conv3d_ref(x, weights):
    return (_ref_axis(x, weights[0], 2)
            + _ref_axis(x, weights[1], 3)
            + _ref_axis(x, weights[2], 4))


# ---------------------------------------------------------------------------
if __name__ == "__main__":
    B, in_dim, out_dim = 2, 4, 4
    S1 = S2 = S3 = 16
    modes_x = modes_y = modes_z = 8

    key = jax.random.PRNGKey(0)
    kx, kw0, kw1, kw2 = jax.random.split(key, 4)

    x = jax.random.normal(kx, (B, in_dim, S1, S2, S3), dtype=jnp.float32)

    def xavier_normal(k, shape):
        # PyTorch xavier_normal_: fan_in = size(1)*prod(dims[2:]), fan_out = size(0)*prod(dims[2:])
        rf = int(np.prod(shape[2:]))
        fan_in = shape[1] * rf
        fan_out = shape[0] * rf
        std = math.sqrt(2.0 / (fan_in + fan_out))
        return std * jax.random.normal(k, shape, dtype=jnp.float32)

    weights = [
        xavier_normal(kw0, (in_dim, out_dim, modes_x, 2)),
        xavier_normal(kw1, (in_dim, out_dim, modes_y, 2)),
        xavier_normal(kw2, (in_dim, out_dim, modes_z, 2)),
    ]

    out = spectral_conv3d(x, weights)
    out = jax.block_until_ready(out)

    ref = jax.block_until_ready(spectral_conv3d_ref(x, weights))
    assert out.shape == (B, out_dim, S1, S2, S3)
    assert out.dtype == jnp.float32
    np.testing.assert_allclose(np.asarray(out), np.asarray(ref), atol=2e-2, rtol=2e-2)

    print("KERNEL_OK")
</pallas_src>

<mosaic_0001>
module attributes {stable_mosaic.version = 11 : i64} {
  func.func @_complex_mix_kernel(%arg0: i32, %arg1: memref<32x64xbf16, #tpu.memory_space<vmem>>, %arg2: memref<32x64xbf16, #tpu.memory_space<vmem>>, %arg3: memref<32x256xbf16, #tpu.memory_space<vmem>>, %arg4: memref<32x256xbf16, #tpu.memory_space<vmem>>, %arg5: memref<32x256xbf16, #tpu.memory_space<vmem>>, %arg6: memref<32x256xbf16, #tpu.memory_space<vmem>>) attributes {dimension_semantics = [#tpu.dimension_semantics<parallel>], iteration_bounds = array<i64: 2>, scalar_prefetch = 0 : i64, scratch_operands = 0 : i64, tpu.core_type = #tpu.core_type<tc>, window_params = [{pipeline_mode = #tpu.pipeline_mode<synchronous>, transform_indices = @transform_0, window_bounds = array<i64: 32, 64>}, {pipeline_mode = #tpu.pipeline_mode<synchronous>, transform_indices = @transform_1, window_bounds = array<i64: 32, 64>}, {transform_indices = @transform_2, window_bounds = array<i64: 32, 256>}, {transform_indices = @transform_3, window_bounds = array<i64: 32, 256>}, {transform_indices = @transform_4, window_bounds = array<i64: 32, 256>}, {transform_indices = @transform_5, window_bounds = array<i64: 32, 256>}]} {
    %c0 = arith.constant 0 : index
    %c0_0 = arith.constant 0 : index
    %0 = vector.load %arg3[%c0, %c0_0] : memref<32x256xbf16, #tpu.memory_space<vmem>>, vector<32x256xbf16>
    %c0_1 = arith.constant 0 : index
    %c0_2 = arith.constant 0 : index
    %1 = vector.load %arg4[%c0_1, %c0_2] : memref<32x256xbf16, #tpu.memory_space<vmem>>, vector<32x256xbf16>
    %2 = tpu.concatenate %0, %1 in 0 : vector<32x256xbf16>, vector<32x256xbf16> -> vector<64x256xbf16>
    %c0_3 = arith.constant 0 : index
    %c0_4 = arith.constant 0 : index
    %3 = vector.load %arg1[%c0_3, %c0_4] : memref<32x64xbf16, #tpu.memory_space<vmem>>, vector<32x64xbf16>
    %cst = arith.constant dense<0.000000e+00> : vector<32x256xf32>
    %4 = tpu.matmul %3, %2, %cst {dimension_numbers = #tpu.dot_dimension_numbers<[1], [0], [0], [1], [0, 0, 1, 1], [], []>} : vector<32x64xbf16>, vector<64x256xbf16>, vector<32x256xf32> -> vector<32x256xf32>
    %5 = arith.truncf %4 : vector<32x256xf32> to vector<32x256xbf16>
    %c0_5 = arith.constant 0 : index
    %c0_6 = arith.constant 0 : index
    %6 = vector.load %arg5[%c0_5, %c0_6] : memref<32x256xbf16, #tpu.memory_space<vmem>>, vector<32x256xbf16>
    tpu.vector_store %arg5[%c0_5, %c0_6], %5 {strides = array<i32>} : memref<32x256xbf16, #tpu.memory_space<vmem>>, vector<32x256xbf16>,
    %c0_7 = arith.constant 0 : index
    %c0_8 = arith.constant 0 : index
    %7 = vector.load %arg2[%c0_7, %c0_8] : memref<32x64xbf16, #tpu.memory_space<vmem>>, vector<32x64xbf16>
    %cst_9 = arith.constant dense<0.000000e+00> : vector<32x256xf32>
    %8 = tpu.matmul %7, %2, %cst_9 {dimension_numbers = #tpu.dot_dimension_numbers<[1], [0], [0], [1], [0, 0, 1, 1], [], []>} : vector<32x64xbf16>, vector<64x256xbf16>, vector<32x256xf32> -> vector<32x256xf32>
    %9 = arith.truncf %8 : vector<32x256xf32> to vector<32x256xbf16>
    %c0_10 = arith.constant 0 : index
    %c0_11 = arith.constant 0 : index
    %10 = vector.load %arg6[%c0_10, %c0_11] : memref<32x256xbf16, #tpu.memory_space<vmem>>, vector<32x256xbf16>
    tpu.vector_store %arg6[%c0_10, %c0_11], %9 {strides = array<i32>} : memref<32x256xbf16, #tpu.memory_space<vmem>>, vector<32x256xbf16>,
    return
  }
  func.func @transform_0(%arg0: i32) -> (i32, i32) {
    %c0_i32 = arith.constant 0 : i32
    %c0_i32_0 = arith.constant 0 : i32
    %c0_i32_1 = arith.constant 0 : i32
    return %c0_i32, %c0_i32_0 : i32, i32
  }
  func.func @transform_1(%arg0: i32) -> (i32, i32) {
    %c0_i32 = arith.constant 0 : i32
    %c0_i32_0 = arith.constant 0 : i32
    %c0_i32_1 = arith.constant 0 : i32
    return %c0_i32, %c0_i32_0 : i32, i32
  }
  func.func @transform_2(%arg0: i32) -> (i32, i32) {
    %c0_i32 = arith.constant 0 : i32
    %c0_i32_0 = arith.constant 0 : i32
    return %c0_i32, %arg0 : i32, i32
  }
  func.func @transform_3(%arg0: i32) -> (i32, i32) {
    %c0_i32 = arith.constant 0 : i32
    %c0_i32_0 = arith.constant 0 : i32
    return %c0_i32, %arg0 : i32, i32
  }
  func.func @transform_4(%arg0: i32) -> (i32, i32) {
    %c0_i32 = arith.constant 0 : i32
    %c0_i32_0 = arith.constant 0 : i32
    return %c0_i32, %arg0 : i32, i32
  }
  func.func @transform_5(%arg0: i32) -> (i32, i32) {
    %c0_i32 = arith.constant 0 : i32
    %c0_i32_0 = arith.constant 0 : i32
    return %c0_i32, %arg0 : i32, i32
  }
}

</mosaic_0001>

<bundles_post_ra>
// kernel: spectral_conv3d.5
= control target key start
LH: loop header
LB: loop body
LE: loop exit
PB: predicated region body
PF: predicated region fallthrough
CT: control target
= control target key end

     0   :  { %s961_s18 = smov 0   ;;  %s963_s19 = smov 0   ;;  %s1078_s0 = inlined_call_operand.vmem [shape: bf16[32,64], index: 0, kind: input, shape index: {}]   ;;  %s1079_s1 = inlined_call_operand.vmem [shape: bf16[32,64], index: 1, kind: input, shape index: {}]   ;;  %s1080_s2 = inlined_call_operand.vmem [shape: bf16[32,512], index: 2, kind: input, shape index: {}]   ;;  %s1081_s3 = inlined_call_operand.vmem [shape: bf16[32,512], index: 3, kind: input, shape index: {}]   ;;  %s1082_s4 = inlined_call_operand.vmem [shape: bf16[32,512], index: 4, kind: output, shape index: {0}]   ;;  %s1083_s5 = inlined_call_operand.vmem [shape: bf16[32,512], index: 5, kind: output, shape index: {1}]  }
   0x1   :  { %s965_s20 = smov 0  }
   0x2 LB: > { %s977_s21 = sadd.s32 4294967295, %s928_s20   ;;  %s980_s22 = sadd.s32 1, %s928_s20   ;;  %s928_s20 = sphi %s965_s20, %s1088_s20   ;;  %s924_s19 = sphi %s963_s19, %s1087_s19   ;;  %s920_s18 = sphi %s961_s18, %s1086_s18  }
   0x3   : > { %s62_s23 = ssub.s32 %s928_s20, %s980_s22  ;;  %s65_s24 = sadd.s32 1, %s924_s19 }
   0x4   : > { %p63_p0 = scmp.eq.s32.totalorder %s62_s23, 0  ;;  %p72_p1 = scmp.ne.s32.totalorder %s924_s19, %s920_s18 }
   0x5   : > { %p73_p2 = scmp.eq.s32.totalorder %s928_s20, 0  ;;  %p128_p3 = scmp.eq.s32.totalorder %s977_s21, 1 }
   0x6   : > { %s990_s25 = scalar_select %p63_p0, %s924_s19, %s65_s24  }
   0x7   : > { %p992_p4 = por %p73_p2, %p72_p1  ;;  %p996_p5 = por %p128_p3, %p72_p1 }
   0x8   : > { %p809_p6 = scmp.ge.s32.totalorder %s928_s20, 2 }
   0xa   : > { %182 = sbr.rel (%p809_p6) target bundleno = 31 (0x1f), region = 24 }
  0x11   : > { %185 = sbr.rel (!%p992_p4) target bundleno = 24 (0x18), region = 28  ;;  %s187_s28 = sand.u32 (%p992_p4), 1, %s924_s19  }
  0x12   : > { %s853_s29 = sshll.u32 (%p992_p4), %s928_s20, 3  ;;  %s810_s30 = sshll.u32 (%p992_p4), %s187_s28, 5 }
  0x13   : > { %s192_s8 = scalar_lea.vmem (%p992_p4), %s1080_s2, %s853_s29  ;;  %s189_s9 = scalar_lea.vmem (%p992_p4), [#allocation2], %s810_s30 }
  0x14   : > { %v226_v0 = vld [vmem:[%s192_s8] sm:$0xff] (%p992_p4)  ;;  %v228_v1 = vld [vmem:[%s192_s8 + $0x10] sm:$0xff] (%p992_p4) }
  0x15   : > { %v230_v2 = vld [vmem:[%s192_s8 + $0x20] sm:$0xff] (%p992_p4)  ;;  %227 = vst [vmem:[%s189_s9] sm:$0xff] (%p992_p4), %v226_v0  ;;  %229 = vst [vmem:[%s189_s9 + $0x8] sm:$0xff] (%p992_p4), %v228_v1  ;;  %v232_v3 = vld [vmem:[%s192_s8 + $0x30] sm:$0xff] (%p992_p4) }
  0x16   : > { %231 = vst [vmem:[%s189_s9 + $0x10] sm:$0xff] (%p992_p4), %v230_v2  ;;  %233 = vst [vmem:[%s189_s9 + $0x18] sm:$0xff] (%p992_p4), %v232_v3 }
  0x18 PF: > { %239 = sbr.rel (!%p992_p4) target bundleno = 31 (0x1f), region = 66  ;;  %s241_s10 = sand.u32 (%p992_p4), 1, %s924_s19  }
  0x19   : > { %s854_s11 = sshll.u32 (%p992_p4), %s928_s20, 3  ;;  %s813_s12 = sshll.u32 (%p992_p4), %s241_s10, 5 }
  0x1a   : > { %s246_s15 = scalar_lea.vmem (%p992_p4), %s1081_s3, %s854_s11  ;;  %s243_s16 = scalar_lea.vmem (%p992_p4), [#allocation3], %s813_s12 }
  0x1b   : > { %v280_v4 = vld [vmem:[%s246_s15] sm:$0xff] (%p992_p4)  ;;  %v282_v5 = vld [vmem:[%s246_s15 + $0x10] sm:$0xff] (%p992_p4) }
  0x1c   : > { %v284_v6 = vld [vmem:[%s246_s15 + $0x20] sm:$0xff] (%p992_p4)  ;;  %281 = vst [vmem:[%s243_s16] sm:$0xff] (%p992_p4), %v280_v4  ;;  %283 = vst [vmem:[%s243_s16 + $0x8] sm:$0xff] (%p992_p4), %v282_v5  ;;  %v286_v7 = vld [vmem:[%s246_s15 + $0x30] sm:$0xff] (%p992_p4) }
  0x1d   : > { %285 = vst [vmem:[%s243_s16 + $0x10] sm:$0xff] (%p992_p4), %v284_v6  ;;  %287 = vst [vmem:[%s243_s16 + $0x18] sm:$0xff] (%p992_p4), %v286_v7 }
  0x1f PF: > { %p816_p7 = scmp.ge.s32.totalorder %s928_s20, 1  ;;  %p292_p8 = scmp.lt.s32.totalorder %s928_s20, 3 }
  0x21   : > { %p293_p9 = pnand %p816_p7, %p292_p8 }
  0x22   : > { %s299_s17 = sand.u32 (!%p293_p9), 1, %s920_s18   ;;  %v930_v8 = vmov (!%p293_p9), 0   ;;  %v902_v17 = vld [vmem:[%s1078_s0] sm:$0xff] (!%p293_p9)   ;;  %vm407_vm0 = vcmask (!%p293_p9), 523264   ;;  %v904_v19 = vld [vmem:[%s1078_s0 + $0x8] sm:$0xff] (!%p293_p9)  }
  0x23   : > { %296 = sbr.rel (%p293_p9) target bundleno = 296 (0x128), region = 104  ;;  %s1018_s23 = sshll.u32 (!%p293_p9), %s299_s17, 5  ;;  %446 = vmatprep.mubr.bf16.mxu0 (!%p293_p9), %v930_v8  ;;  %547 = vmatprep.mubr.bf16.mxu1 (!%p293_p9), %v930_v8  ;;  %v903_v18 = vld [vmem:[%s1079_s1] sm:$0xff] (!%p293_p9)   ;;  %v905_v20 = vld [vmem:[%s1079_s1 + $0x8] sm:$0xff] (!%p293_p9)  }
  0x24   : > { %s301_s24 = scalar_lea.vmem (!%p293_p9), [#allocation2], %s1018_s23  ;;  %s308_s26 = scalar_lea.vmem (!%p293_p9), [#allocation3], %s1018_s23 }
  0x25   : > { %v890_v9 = vld [vmem:[%s301_s24 + $0x4] ss:$8 sps:$4 sm:$0xff] (!%p293_p9)   ;;  %v892_v10 = vld [vmem:[%s301_s24] ss:$8 sps:$4 sm:$0xff] (!%p293_p9)   ;;  %v893_v11 = vld [vmem:[%s301_s24 + $0x14] ss:$8 sps:$4 sm:$0xff] (!%p293_p9)  }
  0x26   : > { %414 = vmatprep.subr.bf16.mxu0 (!%p293_p9), %v890_v9  ;;  %515 = vmatprep.subr.bf16.mxu1 (!%p293_p9), %v890_v9  ;;  %v895_v12 = vld [vmem:[%s301_s24 + $0x10] ss:$8 sps:$4 sm:$0xff] (!%p293_p9)   ;;  %v896_v13 = vld [vmem:[%s308_s26 + $0x4] ss:$8 sps:$4 sm:$0xff] (!%p293_p9)   ;;  %v898_v14 = vld [vmem:[%s308_s26] ss:$8 sps:$4 sm:$0xff] (!%p293_p9)  }
  0x27   : > { %415 = vmatpush1.bf16.msra.mxu0 (!%p293_p9), %v892_v10  ;;  %516 = vmatpush1.bf16.msra.mxu1 (!%p293_p9), %v892_v10  ;;  %v899_v15 = vld [vmem:[%s308_s26 + $0x14] ss:$8 sps:$4 sm:$0xff] (!%p293_p9)   ;;  %v901_v16 = vld [vmem:[%s308_s26 + $0x10] ss:$8 sps:$4 sm:$0xff] (!%p293_p9)   ;;  %s1035_s9 = scalar_lea.vmem (!%p293_p9), [#allocation4], %s1018_s23  ;;  %s1039_s10 = scalar_lea.vmem (!%p293_p9), [#allocation5], %s1018_s23 }
  0x28   : > { %416 = vmatprep.subr.bf16.mxu0 (!%p293_p9), %v893_v11  ;;  %517 = vmatprep.subr.bf16.mxu1 (!%p293_p9), %v893_v11 }
  0x2a   : > { %s863_s11 = sshll.u32 (%p996_p5), %s977_s21, 3 }
  0x2b   : > { %417 = vmatpush1.bf16.msra.mxu0 %v895_v12  ;;  %518 = vmatpush1.bf16.msra.mxu1 %v895_v12  ;;  %s609_s14 = scalar_lea.vmem (%p996_p5), %s1082_s4, %s863_s11 }
  0x2c   : > { %418 = vmatprep.subr.bf16.mxu0 %v896_v13  ;;  %519 = vmatprep.subr.bf16.mxu1 %v896_v13 }
  0x2f   : > { %419 = vmatpush1.bf16.msra.mxu0 %v898_v14  ;;  %520 = vmatpush1.bf16.msra.mxu1 %v898_v14 }
  0x30   : > { %420 = vmatprep.subr.bf16.mxu0 %v899_v15  ;;  %521 = vmatprep.subr.bf16.mxu1 %v899_v15 }
  0x33   : > { %421 = vmatpush1.bf16.msra.mxu0 %v901_v16  ;;  %522 = vmatpush1.bf16.msra.mxu1 %v901_v16 }
  0x36   : > { %831 = vmatmul.mubr.msk.bf16.vlgmr.msra.gmra.mrb[0].mxu0 %vm407_vm0, %v902_v17  ;;  %839 = vmatmul.mubr.msk.bf16.vlgmr.msra.gmra.mrb[0].mxu1 %vm407_vm0, %v903_v18 }
  0x37   : > { %456 = vmatprep.mubr.bf16.mxu0 %v930_v8  ;;  %557 = vmatprep.mubr.bf16.mxu1 %v930_v8 }
  0x3e   : > { %832 = vmatmul.mubr.msk.bf16.gmra.mrb[4].mxu0 %vm407_vm0, %v904_v19  ;;  %840 = vmatmul.mubr.msk.bf16.gmra.mrb[4].mxu1 %vm407_vm0, %v905_v20 }
 0x109   : > { %v448_v21 = vpop.f32.mrb[0].mxu0  ;;  %v549_v22 = vpop.f32.mrb[0].mxu1 }
 0x10a   : > { %v450_v23 = vpop.f32.mrb[1].mxu0  ;;  %v551_v24 = vpop.f32.mrb[1].mxu1 }
 0x10b   : > { %v855_v25 = vpack.c.bf16 %v450_v23, %v448_v21  ;;  %v859_v26 = vpack.c.bf16 %v551_v24, %v549_v22  ;;  %v452_v27 = vpop.f32.mrb[2].mxu0  ;;  %v553_v28 = vpop.f32.mrb[2].mxu1 }
 0x10c   : > { %v454_v29 = vpop.f32.mrb[3].mxu0  ;;  %v555_v30 = vpop.f32.mrb[3].mxu1 }
 0x10d   : > { %491 = vst [vmem:[%s1035_s9] sm:$0xff] %v855_v25  ;;  %592 = vst [vmem:[%s1039_s10] sm:$0xff] %v859_v26  ;;  %v856_v31 = vpack.c.bf16 %v454_v29, %v452_v27  ;;  %v860_v32 = vpack.c.bf16 %v555_v30, %v553_v28 }
 0x10f   : > { %492 = vst [vmem:[%s1035_s9 + $0x8] sm:$0xff] %v856_v31  ;;  %593 = vst [vmem:[%s1039_s10 + $0x8] sm:$0xff] %v860_v32 }
 0x111   : > { %v458_v33 = vpop.f32.mrb[4].mxu0  ;;  %v559_v34 = vpop.f32.mrb[4].mxu1  ;;  %606 = sbr.rel (!%p996_p5) target bundleno = 288 (0x120), region = 116 }
 0x112   : > { %v460_v35 = vpop.f32.mrb[5].mxu0  ;;  %v561_v36 = vpop.f32.mrb[5].mxu1 }
 0x113   : > { %v857_v37 = vpack.c.bf16 %v460_v35, %v458_v33  ;;  %v861_v38 = vpack.c.bf16 %v561_v36, %v559_v34  ;;  %v462_v39 = vpop.f32.mrb[6].mxu0  ;;  %v563_v40 = vpop.f32.mrb[6].mxu1 }
 0x114   : > { %v464_v41 = vpop.f32.mrb[7].mxu0  ;;  %v565_v42 = vpop.f32.mrb[7].mxu1  ;;  %v643_v45 = vld [vmem:[%s1035_s9] sm:$0xff] (%p996_p5) }
 0x115   : > { %493 = vst [vmem:[%s1035_s9 + $0x10] sm:$0xff] %v857_v37  ;;  %594 = vst [vmem:[%s1039_s10 + $0x10] sm:$0xff] %v861_v38  ;;  %v858_v43 = vpack.c.bf16 %v464_v41, %v462_v39  ;;  %v862_v44 = vpack.c.bf16 %v565_v42, %v563_v40 }
 0x116   : > { %v645_v46 = vld [vmem:[%s1035_s9 + $0x8] sm:$0xff] (%p996_p5)  ;;  %644 = vst [vmem:[%s609_s14] sm:$0xff] (%p996_p5), %v643_v45 }
 0x117   : > { %494 = vst [vmem:[%s1035_s9 + $0x18] sm:$0xff] %v858_v43  ;;  %595 = vst [vmem:[%s1039_s10 + $0x18] sm:$0xff] %v862_v44 }
 0x118   : > { %646 = vst [vmem:[%s609_s14 + $0x10] sm:$0xff] %v645_v46 }
 0x11c   : > { %v647_v47 = vld [vmem:[%s1035_s9 + $0x10] sm:$0xff] }
 0x11d   : > { %648 = vst [vmem:[%s609_s14 + $0x20] sm:$0xff] %v647_v47 }
 0x11e   : > { %v649_v48 = vld [vmem:[%s1035_s9 + $0x18] sm:$0xff] }
 0x11f   : > { %650 = vst [vmem:[%s609_s14 + $0x30] sm:$0xff] %v649_v48 }
 0x120 PF: > { %656 = sbr.rel (!%p996_p5) target bundleno = 296 (0x128), region = 154  ;;  %s864_s15 = sshll.u32 (%p996_p5), %s977_s21, 3  ;;  %v693_v49 = vld [vmem:[%s1039_s10] sm:$0xff] (%p996_p5)  ;;  %v695_v50 = vld [vmem:[%s1039_s10 + $0x8] sm:$0xff] (%p996_p5) }
 0x121   : > { %s659_s23 = scalar_lea.vmem (%p996_p5), %s1083_s5, %s864_s15 }
 0x122   : > { %694 = vst [vmem:[%s659_s23] sm:$0xff] (%p996_p5), %v693_v49  ;;  %696 = vst [vmem:[%s659_s23 + $0x10] sm:$0xff] (%p996_p5), %v695_v50 }
 0x124   : > { %v697_v51 = vld [vmem:[%s1039_s10 + $0x10] sm:$0xff] (%p996_p5) }
 0x125   : > { %698 = vst [vmem:[%s659_s23 + $0x20] sm:$0xff] (%p996_p5), %v697_v51 }
 0x126   : > { %v699_v52 = vld [vmem:[%s1039_s10 + $0x18] sm:$0xff] (%p996_p5) }
 0x127   : > { %700 = vst [vmem:[%s659_s23 + $0x30] sm:$0xff] %v699_v52 }
 0x128 PF: > { %p13_p10 = scmp.ge.s32.totalorder %s980_s22, 4   ;;  %s1086_s18 = smov %s924_s19 }
 0x129   : > { %s1087_s19 = smov %s990_s25  ;;  %s1088_s20 = smov %s980_s22 }
 0x12a   :  { %15 = sbr.rel (!%p13_p10) target bundleno = 2 (0x2), region = 243 }

// kernel: reverse.11
= control target key start
LH: loop header
LB: loop body
LE: loop exit
PB: predicated region body
PF: predicated region fallthrough
CT: control target
= control target key end

     0   :  { %v2_v0 = vlaneseq  ;;  %s3064_s0 = inlined_call_operand.vmem [shape: f32[2,4,16,16,7], index: 0, kind: input, shape index: {}]   ;;  %s3065_s1 = inlined_call_operand.vmem [shape: f32[2,4,16,16,7], index: 1, kind: output, shape index: {}]  }
   0x2   :  { %v2498_v1 = vsub.s32 6, %v2_v0 }
   0x4   :  { %4 = vset.pattern.permute.xlu0 %v2498_v1 }
   0x5   :  { %s2501_s6 = smov 0   ;;  %s2503_s7 = smov 0  }
   0x6   :  { %s2505_s8 = smov 0  }
   0x7 LB: > { %s2165_s9 = sadd.s32 4294967295, %s2486_s8   ;;  %s35_s10 = sadd.s32 1, %s2482_s7  ;;  %s2486_s8 = sphi %s2505_s8, %s10_s8   ;;  %s2482_s7 = sphi %s2503_s7, %s3067_s7   ;;  %s2478_s6 = sphi %s2501_s6, %s3066_s6  }
   0x8   : > { %p37_p0 = scmp.ge.s32.totalorder %s35_s10, 2  ;;  %p2167_p1 = scmp.ge.s32.totalorder %s2486_s8, 2 }
   0x9   : > { %s59_s11 = sand.u32 (!%p2167_p1), 1, %s2486_s8   ;;  %s2436_s12 = sshll.u32 (!%p2167_p1), %s2482_s7, 7 }
   0xa   : > { %s3069_s10 = smov (%p37_p0, %s35_s10), 0  ;;  %57 = sbr.rel (%p2167_p1) target bundleno = 77 (0x4d), region = 16 }
   0xb   : > { %s2168_s13 = sshll.u32 (!%p2167_p1), %s59_s11, 10  ;;  %s2526_s16 = scalar_lea.vmem (!%p2167_p1), %s3064_s0, %s2436_s12 }
   0xc   : > { %v357_v2 = vld [vmem:[%s2526_s16] sm:$0xff] (!%p2167_p1)  ;;  %v359_v3 = vld [vmem:[%s2526_s16 + $0x8] sm:$0xff] (!%p2167_p1)  ;;  %v361_v4 = vld [vmem:[%s2526_s16 + $0x10] sm:$0xff] (!%p2167_p1)  ;;  %s2531_s17 = scalar_lea.vmem (!%p2167_p1), [#allocation0], %s2168_s13 }
   0xd   : > { %358 = vst [vmem:[%s2531_s17] sm:$0xff] (!%p2167_p1), %v357_v2  ;;  %360 = vst [vmem:[%s2531_s17 + $0x8] sm:$0xff] (!%p2167_p1), %v359_v3  ;;  %v363_v5 = vld [vmem:[%s2526_s16 + $0x18] sm:$0xff] (!%p2167_p1)  ;;  %v365_v6 = vld [vmem:[%s2526_s16 + $0x20] sm:$0xff] (!%p2167_p1) }
   0xe   : > { %362 = vst [vmem:[%s2531_s17 + $0x10] sm:$0xff] (!%p2167_p1), %v361_v4  ;;  %v367_v7 = vld [vmem:[%s2526_s16 + $0x28] sm:$0xff] (!%p2167_p1)  ;;  %364 = vst [vmem:[%s2531_s17 + $0x18] sm:$0xff] (!%p2167_p1), %v363_v5  ;;  %v369_v8 = vld [vmem:[%s2526_s16 + $0x30] sm:$0xff] (!%p2167_p1) }
   0xf   : > { %366 = vst [vmem:[%s2531_s17 + $0x20] sm:$0xff] (!%p2167_p1), %v365_v6  ;;  %368 = vst [vmem:[%s2531_s17 + $0x28] sm:$0xff] (!%p2167_p1), %v367_v7  ;;  %v371_v9 = vld [vmem:[%s2526_s16 + $0x38] sm:$0xff] (!%p2167_p1)  ;;  %v373_v10 = vld [vmem:[%s2526_s16 + $0x40] sm:$0xff] (!%p2167_p1) }
  0x10   : > { %370 = vst [vmem:[%s2531_s17 + $0x30] sm:$0xff] (!%p2167_p1), %v369_v8  ;;  %372 = vst [vmem:[%s2531_s17 + $0x38] sm:$0xff] (!%p2167_p1), %v371_v9  ;;  %v375_v11 = vld [vmem:[%s2526_s16 + $0x48] sm:$0xff] (!%p2167_p1)  ;;  %v377_v12 = vld [vmem:[%s2526_s16 + $0x50] sm:$0xff] (!%p2167_p1) }
  0x11   : > { %374 = vst [vmem:[%s2531_s17 + $0x40] sm:$0xff] %v373_v10  ;;  %v379_v13 = vld [vmem:[%s2526_s16 + $0x58] sm:$0xff]  ;;  %376 = vst [vmem:[%s2531_s17 + $0x48] sm:$0xff] %v375_v11  ;;  %v381_v14 = vld [vmem:[%s2526_s16 + $0x60] sm:$0xff] }
  0x12   : > { %378 = vst [vmem:[%s2531_s17 + $0x50] sm:$0xff] %v377_v12  ;;  %380 = vst [vmem:[%s2531_s17 + $0x58] sm:$0xff] %v379_v13  ;;  %v383_v15 = vld [vmem:[%s2526_s16 + $0x68] sm:$0xff]  ;;  %v385_v16 = vld [vmem:[%s2526_s16 + $0x70] sm:$0xff] }
  0x13   : > { %382 = vst [vmem:[%s2531_s17 + $0x60] sm:$0xff] %v381_v14  ;;  %384 = vst [vmem:[%s2531_s17 + $0x68] sm:$0xff] %v383_v15  ;;  %v387_v17 = vld [vmem:[%s2526_s16 + $0x78] sm:$0xff]  ;;  %v389_v18 = vld [vmem:[%s2526_s16 + $0x100] sm:$0xff] }
  0x14   : > { %386 = vst [vmem:[%s2531_s17 + $0x70] sm:$0xff] %v385_v16  ;;  %v391_v19 = vld [vmem:[%s2526_s16 + $0x108] sm:$0xff]  ;;  %388 = vst [vmem:[%s2531_s17 + $0x78] sm:$0xff] %v387_v17  ;;  %v393_v20 = vld [vmem:[%s2526_s16 + $0x110] sm:$0xff] }
  0x15   : > { %390 = vst [vmem:[%s2531_s17 + $0x80] sm:$0xff] %v389_v18  ;;  %392 = vst [vmem:[%s2531_s17 + $0x88] sm:$0xff] %v391_v19  ;;  %v395_v21 = vld [vmem:[%s2526_s16 + $0x118] sm:$0xff]  ;;  %v397_v22 = vld [vmem:[%s2526_s16 + $0x120] sm:$0xff] }
  0x16   : > { %394 = vst [vmem:[%s2531_s17 + $0x90] sm:$0xff] %v393_v20  ;;  %396 = vst [vmem:[%s2531_s17 + $0x98] sm:$0xff] %v395_v21  ;;  %v399_v23 = vld [vmem:[%s2526_s16 + $0x128] sm:$0xff]  ;;  %v401_v24 = vld [vmem:[%s2526_s16 + $0x130] sm:$0xff] }
  0x17   : > { %398 = vst [vmem:[%s2531_s17 + $0xa0] sm:$0xff] %v397_v22  ;;  %v403_v25 = vld [vmem:[%s2526_s16 + $0x138] sm:$0xff]  ;;  %400 = vst [vmem:[%s2531_s17 + $0xa8] sm:$0xff] %v399_v23  ;;  %v405_v26 = vld [vmem:[%s2526_s16 + $0x140] sm:$0xff] }
  0x18   : > { %402 = vst [vmem:[%s2531_s17 + $0xb0] sm:$0xff] %v401_v24  ;;  %404 = vst [vmem:[%s2531_s17 + $0xb8] sm:$0xff] %v403_v25  ;;  %v407_v27 = vld [vmem:[%s2526_s16 + $0x148] sm:$0xff]  ;;  %v409_v28 = vld [vmem:[%s2526_s16 + $0x150] sm:$0xff] }
  0x19   : > { %406 = vst [vmem:[%s2531_s17 + $0xc0] sm:$0xff] %v405_v26  ;;  %408 = vst [vmem:[%s2531_s17 + $0xc8] sm:$0xff] %v407_v27  ;;  %v411_v29 = vld [vmem:[%s2526_s16 + $0x158] sm:$0xff]  ;;  %v413_v30 = vld [vmem:[%s2526_s16 + $0x160] sm:$0xff] }
  0x1a   : > { %410 = vst [vmem:[%s2531_s17 + $0xd0] sm:$0xff] %v409_v28  ;;  %v415_v31 = vld [vmem:[%s2526_s16 + $0x168] sm:$0xff]  ;;  %412 = vst [vmem:[%s2531_s17 + $0xd8] sm:$0xff] %v411_v29  ;;  %v417_v32 = vld [vmem:[%s2526_s16 + $0x170] sm:$0xff] }
  0x1b   : > { %414 = vst [vmem:[%s2531_s17 + $0xe0] sm:$0xff] %v413_v30  ;;  %416 = vst [vmem:[%s2531_s17 + $0xe8] sm:$0xff] %v415_v31  ;;  %v419_v33 = vld [vmem:[%s2526_s16 + $0x178] sm:$0xff]  ;;  %v421_v34 = vld [vmem:[%s2526_s16 + $0x200] sm:$0xff] }
  0x1c   : > { %418 = vst [vmem:[%s2531_s17 + $0xf0] sm:$0xff] %v417_v32  ;;  %420 = vst [vmem:[%s2531_s17 + $0xf8] sm:$0xff] %v419_v33  ;;  %v423_v35 = vld [vmem:[%s2526_s16 + $0x208] sm:$0xff]  ;;  %v425_v36 = vld [vmem:[%s2526_s16 + $0x210] sm:$0xff] }
  0x1d   : > { %422 = vst [vmem:[%s2531_s17 + $0x100] sm:$0xff] %v421_v34  ;;  %v427_v37 = vld [vmem:[%s2526_s16 + $0x218] sm:$0xff]  ;;  %424 = vst [vmem:[%s2531_s17 + $0x108] sm:$0xff] %v423_v35  ;;  %v429_v38 = vld [vmem:[%s2526_s16 + $0x220] sm:$0xff] }
  0x1e   : > { %426 = vst [vmem:[%s2531_s17 + $0x110] sm:$0xff] %v425_v36  ;;  %428 = vst [vmem:[%s2531_s17 + $0x118] sm:$0xff] %v427_v37  ;;  %v431_v39 = vld [vmem:[%s2526_s16 + $0x228] sm:$0xff]  ;;  %v433_v40 = vld [vmem:[%s2526_s16 + $0x230] sm:$0xff] }
  0x1f   : > { %430 = vst [vmem:[%s2531_s17 + $0x120] sm:$0xff] %v429_v38  ;;  %432 = vst [vmem:[%s2531_s17 + $0x128] sm:$0xff] %v431_v39  ;;  %v435_v41 = vld [vmem:[%s2526_s16 + $0x238] sm:$0xff]  ;;  %v437_v42 = vld [vmem:[%s2526_s16 + $0x240] sm:$0xff] }
  0x20   : > { %434 = vst [vmem:[%s2531_s17 + $0x130] sm:$0xff] %v433_v40  ;;  %v439_v43 = vld [vmem:[%s2526_s16 + $0x248] sm:$0xff]  ;;  %436 = vst [vmem:[%s2531_s17 + $0x138] sm:$0xff] %v435_v41  ;;  %v441_v44 = vld [vmem:[%s2526_s16 + $0x250] sm:$0xff] }
  0x21   : > { %438 = vst [vmem:[%s2531_s17 + $0x140] sm:$0xff] %v437_v42  ;;  %440 = vst [vmem:[%s2531_s17 + $0x148] sm:$0xff] %v439_v43  ;;  %v443_v45 = vld [vmem:[%s2526_s16 + $0x258] sm:$0xff]  ;;  %v445_v46 = vld [vmem:[%s2526_s16 + $0x260] sm:$0xff] }
  0x22   : > { %442 = vst [vmem:[%s2531_s17 + $0x150] sm:$0xff] %v441_v44  ;;  %444 = vst [vmem:[%s2531_s17 + $0x158] sm:$0xff] %v443_v45  ;;  %v447_v47 = vld [vmem:[%s2526_s16 + $0x268] sm:$0xff]  ;;  %v449_v48 = vld [vmem:[%s2526_s16 + $0x270] sm:$0xff] }
  0x23   : > { %446 = vst [vmem:[%s2531_s17 + $0x160] sm:$0xff] %v445_v46  ;;  %v451_v49 = vld [vmem:[%s2526_s16 + $0x278] sm:$0xff]  ;;  %448 = vst [vmem:[%s2531_s17 + $0x168] sm:$0xff] %v447_v47  ;;  %v453_v50 = vld [vmem:[%s2526_s16 + $0x300] sm:$0xff] }
  0x24   : > { %450 = vst [vmem:[%s2531_s17 + $0x170] sm:$0xff] %v449_v48  ;;  %452 = vst [vmem:[%s2531_s17 + $0x178] sm:$0xff] %v451_v49  ;;  %v455_v51 = vld [vmem:[%s2526_s16 + $0x308] sm:$0xff]  ;;  %v457_v52 = vld [vmem:[%s2526_s16 + $0x310] sm:$0xff] }
  0x25   : > { %454 = vst [vmem:[%s2531_s17 + $0x180] sm:$0xff] %v453_v50  ;;  %456 = vst [vmem:[%s2531_s17 + $0x188] sm:$0xff] %v455_v51  ;;  %v459_v53 = vld [vmem:[%s2526_s16 + $0x318] sm:$0xff]  ;;  %v461_v54 = vld [vmem:[%s2526_s16 + $0x320] sm:$0xff] }
  0x26   : > { %458 = vst [vmem:[%s2531_s17 + $0x190] sm:$0xff] %v457_v52  ;;  %v463_v55 = vld [vmem:[%s2526_s16 + $0x328] sm:$0xff]  ;;  %460 = vst [vmem:[%s2531_s17 + $0x198] sm:$0xff] %v459_v53  ;;  %v465_v56 = vld [vmem:[%s2526_s16 + $0x330] sm:$0xff] }
  0x27   : > { %462 = vst [vmem:[%s2531_s17 + $0x1a0] sm:$0xff] %v461_v54  ;;  %464 = vst [vmem:[%s2531_s17 + $0x1a8] sm:$0xff] %v463_v55  ;;  %v467_v57 = vld [vmem:[%s2526_s16 + $0x338] sm:$0xff]  ;;  %v469_v58 = vld [vmem:[%s2526_s16 + $0x340] sm:$0xff] }
  0x28   : > { %466 = vst [vmem:[%s2531_s17 + $0x1b0] sm:$0xff] %v465_v56  ;;  %468 = vst [vmem:[%s2531_s17 + $0x1b8] sm:$0xff] %v467_v57  ;;  %v471_v59 = vld [vmem:[%s2526_s16 + $0x348] sm:$0xff]  ;;  %v473_v60 = vld [vmem:[%s2526_s16 + $0x350] sm:$0xff] }
  0x29   : > { %470 = vst [vmem:[%s2531_s17 + $0x1c0] sm:$0xff] %v469_v58  ;;  %v475_v61 = vld [vmem:[%s2526_s16 + $0x358] sm:$0xff]  ;;  %472 = vst [vmem:[%s2531_s17 + $0x1c8] sm:$0xff] %v471_v59  ;;  %v477_v62 = vld [vmem:[%s2526_s16 + $0x360] sm:$0xff] }
  0x2a   : > { %474 = vst [vmem:[%s2531_s17 + $0x1d0] sm:$0xff] %v473_v60  ;;  %476 = vst [vmem:[%s2531_s17 + $0x1d8] sm:$0xff] %v475_v61  ;;  %v479_v63 = vld [vmem:[%s2526_s16 + $0x368] sm:$0xff]  ;;  %v481_v0 = vld [vmem:[%s2526_s16 + $0x370] sm:$0xff] }
  0x2b   : > { %478 = vst [vmem:[%s2531_s17 + $0x1e0] sm:$0xff] %v477_v62  ;;  %480 = vst [vmem:[%s2531_s17 + $0x1e8] sm:$0xff] %v479_v63  ;;  %v483_v2 = vld [vmem:[%s2526_s16 + $0x378] sm:$0xff]  ;;  %v485_v3 = vld [vmem:[%s2526_s16 + $0x400] sm:$0xff] }
  0x2c   : > { %482 = vst [vmem:[%s2531_s17 + $0x1f0] sm:$0xff] %v481_v0  ;;  %v487_v4 = vld [vmem:[%s2526_s16 + $0x408] sm:$0xff]  ;;  %484 = vst [vmem:[%s2531_s17 + $0x1f8] sm:$0xff] %v483_v2  ;;  %v489_v5 = vld [vmem:[%s2526_s16 + $0x410] sm:$0xff] }
  0x2d   : > { %486 = vst [vmem:[%s2531_s17 + $0x200] sm:$0xff] %v485_v3  ;;  %488 = vst [vmem:[%s2531_s17 + $0x208] sm:$0xff] %v487_v4  ;;  %v491_v6 = vld [vmem:[%s2526_s16 + $0x418] sm:$0xff]  ;;  %v493_v7 = vld [vmem:[%s2526_s16 + $0x420] sm:$0xff] }
  0x2e   : > { %490 = vst [vmem:[%s2531_s17 + $0x210] sm:$0xff] %v489_v5  ;;  %492 = vst [vmem:[%s2531_s17 + $0x218] sm:$0xff] %v491_v6  ;;  %v495_v8 = vld [vmem:[%s2526_s16 + $0x428] sm:$0xff]  ;;  %v497_v9 = vld [vmem:[%s2526_s16 + $0x430] sm:$0xff] }
  0x2f   : > { %494 = vst [vmem:[%s2531_s17 + $0x220] sm:$0xff] %v493_v7  ;;  %v499_v10 = vld [vmem:[%s2526_s16 + $0x438] sm:$0xff]  ;;  %496 = vst [vmem:[%s2531_s17 + $0x228] sm:$0xff] %v495_v8  ;;  %v501_v11 = vld [vmem:[%s2526_s16 + $0x440] sm:$0xff] }
  0x30   : > { %498 = vst [vmem:[%s2531_s17 + $0x230] sm:$0xff] %v497_v9  ;;  %500 = vst [vmem:[%s2531_s17 + $0x238] sm:$0xff] %v499_v10  ;;  %v503_v12 = vld [vmem:[%s2526_s16 + $0x448] sm:$0xff]  ;;  %v505_v13 = vld [vmem:[%s2526_s16 + $0x450] sm:$0xff] }
  0x31   : > { %502 = vst [vmem:[%s2531_s17 + $0x240] sm:$0xff] %v501_v11  ;;  %504 = vst [vmem:[%s2531_s17 + $0x248] sm:$0xff] %v503_v12  ;;  %v507_v14 = vld [vmem:[%s2526_s16 + $0x458] sm:$0xff]  ;;  %v509_v15 = vld [vmem:[%s2526_s16 + $0x460] sm:$0xff] }
  0x32   : > { %506 = vst [vmem:[%s2531_s17 + $0x250] sm:$0xff] %v505_v13  ;;  %v511_v16 = vld [vmem:[%s2526_s16 + $0x468] sm:$0xff]  ;;  %508 = vst [vmem:[%s2531_s17 + $0x258] sm:$0xff] %v507_v14  ;;  %v513_v17 = vld [vmem:[%s2526_s16 + $0x470] sm:$0xff] }
  0x33   : > { %510 = vst [vmem:[%s2531_s17 + $0x260] sm:$0xff] %v509_v15  ;;  %512 = vst [vmem:[%s2531_s17 + $0x268] sm:$0xff] %v511_v16  ;;  %v515_v18 = vld [vmem:[%s2526_s16 + $0x478] sm:$0xff]  ;;  %v517_v19 = vld [vmem:[%s2526_s16 + $0x500] sm:$0xff] }
  0x34   : > { %514 = vst [vmem:[%s2531_s17 + $0x270] sm:$0xff] %v513_v17  ;;  %516 = vst [vmem:[%s2531_s17 + $0x278] sm:$0xff] %v515_v18  ;;  %v519_v20 = vld [vmem:[%s2526_s16 + $0x508] sm:$0xff]  ;;  %v521_v21 = vld [vmem:[%s2526_s16 + $0x510] sm:$0xff] }
  0x35   : > { %518 = vst [vmem:[%s2531_s17 + $0x280] sm:$0xff] %v517_v19  ;;  %v523_v22 = vld [vmem:[%s2526_s16 + $0x518] sm:$0xff]  ;;  %520 = vst [vmem:[%s2531_s17 + $0x288] sm:$0xff] %v519_v20  ;;  %v525_v23 = vld [vmem:[%s2526_s16 + $0x520] sm:$0xff] }
  0x36   : > { %522 = vst [vmem:[%s2531_s17 + $0x290] sm:$0xff] %v521_v21  ;;  %524 = vst [vmem:[%s2531_s17 + $0x298] sm:$0xff] %v523_v22  ;;  %v527_v24 = vld [vmem:[%s2526_s16 + $0x528] sm:$0xff]  ;;  %v529_v25 = vld [vmem:[%s2526_s16 + $0x530] sm:$0xff] }
  0x37   : > { %526 = vst [vmem:[%s2531_s17 + $0x2a0] sm:$0xff] %v525_v23  ;;  %528 = vst [vmem:[%s2531_s17 + $0x2a8] sm:$0xff] %v527_v24  ;;  %v531_v26 = vld [vmem:[%s2526_s16 + $0x538] sm:$0xff]  ;;  %v533_v27 = vld [vmem:[%s2526_s16 + $0x540] sm:$0xff] }
  0x38   : > { %530 = vst [vmem:[%s2531_s17 + $0x2b0] sm:$0xff] %v529_v25  ;;  %v535_v28 = vld [vmem:[%s2526_s16 + $0x548] sm:$0xff]  ;;  %532 = vst [vmem:[%s2531_s17 + $0x2b8] sm:$0xff] %v531_v26  ;;  %v537_v29 = vld [vmem:[%s2526_s16 + $0x550] sm:$0xff] }
  0x39   : > { %534 = vst [vmem:[%s2531_s17 + $0x2c0] sm:$0xff] %v533_v27  ;;  %536 = vst [vmem:[%s2531_s17 + $0x2c8] sm:$0xff] %v535_v28  ;;  %v539_v30 = vld [vmem:[%s2526_s16 + $0x558] sm:$0xff]  ;;  %v541_v31 = vld [vmem:[%s2526_s16 + $0x560] sm:$0xff] }
  0x3a   : > { %538 = vst [vmem:[%s2531_s17 + $0x2d0] sm:$0xff] %v537_v29  ;;  %540 = vst [vmem:[%s2531_s17 + $0x2d8] sm:$0xff] %v539_v30  ;;  %v543_v32 = vld [vmem:[%s2526_s16 + $0x568] sm:$0xff]  ;;  %v545_v33 = vld [vmem:[%s2526_s16 + $0x570] sm:$0xff] }
  0x3b   : > { %542 = vst [vmem:[%s2531_s17 + $0x2e0] sm:$0xff] %v541_v31  ;;  %v547_v34 = vld [vmem:[%s2526_s16 + $0x578] sm:$0xff]  ;;  %544 = vst [vmem:[%s2531_s17 + $0x2e8] sm:$0xff] %v543_v32  ;;  %v549_v35 = vld [vmem:[%s2526_s16 + $0x600] sm:$0xff] }
  0x3c   : > { %546 = vst [vmem:[%s2531_s17 + $0x2f0] sm:$0xff] %v545_v33  ;;  %548 = vst [vmem:[%s2531_s17 + $0x2f8] sm:$0xff] %v547_v34  ;;  %v551_v36 = vld [vmem:[%s2526_s16 + $0x608] sm:$0xff]  ;;  %v553_v37 = vld [vmem:[%s2526_s16 + $0x610] sm:$0xff] }
  0x3d   : > { %550 = vst [vmem:[%s2531_s17 + $0x300] sm:$0xff] %v549_v35  ;;  %552 = vst [vmem:[%s2531_s17 + $0x308] sm:$0xff] %v551_v36  ;;  %v555_v38 = vld [vmem:[%s2526_s16 + $0x618] sm:$0xff]  ;;  %v557_v39 = vld [vmem:[%s2526_s16 + $0x620] sm:$0xff] }
  0x3e   : > { %554 = vst [vmem:[%s2531_s17 + $0x310] sm:$0xff] %v553_v37  ;;  %v559_v40 = vld [vmem:[%s2526_s16 + $0x628] sm:$0xff]  ;;  %556 = vst [vmem:[%s2531_s17 + $0x318] sm:$0xff] %v555_v38  ;;  %v561_v41 = vld [vmem:[%s2526_s16 + $0x630] sm:$0xff] }
  0x3f   : > { %558 = vst [vmem:[%s2531_s17 + $0x320] sm:$0xff] %v557_v39  ;;  %560 = vst [vmem:[%s2531_s17 + $0x328] sm:$0xff] %v559_v40  ;;  %v563_v42 = vld [vmem:[%s2526_s16 + $0x638] sm:$0xff]  ;;  %v565_v43 = vld [vmem:[%s2526_s16 + $0x640] sm:$0xff] }
  0x40   : > { %562 = vst [vmem:[%s2531_s17 + $0x330] sm:$0xff] %v561_v41  ;;  %564 = vst [vmem:[%s2531_s17 + $0x338] sm:$0xff] %v563_v42  ;;  %v567_v44 = vld [vmem:[%s2526_s16 + $0x648] sm:$0xff]  ;;  %v569_v45 = vld [vmem:[%s2526_s16 + $0x650] sm:$0xff] }
  0x41   : > { %566 = vst [vmem:[%s2531_s17 + $0x340] sm:$0xff] %v565_v43  ;;  %v571_v46 = vld [vmem:[%s2526_s16 + $0x658] sm:$0xff]  ;;  %568 = vst [vmem:[%s2531_s17 + $0x348] sm:$0xff] %v567_v44  ;;  %v573_v47 = vld [vmem:[%s2526_s16 + $0x660] sm:$0xff] }
  0x42   : > { %570 = vst [vmem:[%s2531_s17 + $0x350] sm:$0xff] %v569_v45  ;;  %572 = vst [vmem:[%s2531_s17 + $0x358] sm:$0xff] %v571_v46  ;;  %v575_v48 = vld [vmem:[%s2526_s16 + $0x668] sm:$0xff]  ;;  %v577_v49 = vld [vmem:[%s2526_s16 + $0x670] sm:$0xff] }
  0x43   : > { %574 = vst [vmem:[%s2531_s17 + $0x360] sm:$0xff] %v573_v47  ;;  %576 = vst [vmem:[%s2531_s17 + $0x368] sm:$0xff] %v575_v48  ;;  %v579_v50 = vld [vmem:[%s2526_s16 + $0x678] sm:$0xff]  ;;  %v581_v51 = vld [vmem:[%s2526_s16 + $0x700] sm:$0xff] }
  0x44   : > { %578 = vst [vmem:[%s2531_s17 + $0x370] sm:$0xff] %v577_v49  ;;  %v583_v52 = vld [vmem:[%s2526_s16 + $0x708] sm:$0xff]  ;;  %580 = vst [vmem:[%s2531_s17 + $0x378] sm:$0xff] %v579_v50  ;;  %v585_v53 = vld [vmem:[%s2526_s16 + $0x710] sm:$0xff] }
  0x45   : > { %582 = vst [vmem:[%s2531_s17 + $0x380] sm:$0xff] %v581_v51  ;;  %584 = vst [vmem:[%s2531_s17 + $0x388] sm:$0xff] %v583_v52  ;;  %v587_v54 = vld [vmem:[%s2526_s16 + $0x718] sm:$0xff]  ;;  %v589_v55 = vld [vmem:[%s2526_s16 + $0x720] sm:$0xff] }
  0x46   : > { %586 = vst [vmem:[%s2531_s17 + $0x390] sm:$0xff] %v585_v53  ;;  %588 = vst [vmem:[%s2531_s17 + $0x398] sm:$0xff] %v587_v54  ;;  %v591_v56 = vld [vmem:[%s2526_s16 + $0x728] sm:$0xff]  ;;  %v593_v57 = vld [vmem:[%s2526_s16 + $0x730] sm:$0xff] }
  0x47   : > { %590 = vst [vmem:[%s2531_s17 + $0x3a0] sm:$0xff] %v589_v55  ;;  %v595_v58 = vld [vmem:[%s2526_s16 + $0x738] sm:$0xff]  ;;  %592 = vst [vmem:[%s2531_s17 + $0x3a8] sm:$0xff] %v591_v56  ;;  %v597_v59 = vld [vmem:[%s2526_s16 + $0x740] sm:$0xff] }
  0x48   : > { %594 = vst [vmem:[%s2531_s17 + $0x3b0] sm:$0xff] %v593_v57  ;;  %596 = vst [vmem:[%s2531_s17 + $0x3b8] sm:$0xff] %v595_v58  ;;  %v599_v60 = vld [vmem:[%s2526_s16 + $0x748] sm:$0xff]  ;;  %v601_v61 = vld [vmem:[%s2526_s16 + $0x750] sm:$0xff] }
  0x49   : > { %598 = vst [vmem:[%s2531_s17 + $0x3c0] sm:$0xff] %v597_v59  ;;  %600 = vst [vmem:[%s2531_s17 + $0x3c8] sm:$0xff] %v599_v60  ;;  %v603_v62 = vld [vmem:[%s2526_s16 + $0x758] sm:$0xff]  ;;  %v605_v63 = vld [vmem:[%s2526_s16 + $0x760] sm:$0xff] }
  0x4a   : > { %602 = vst [vmem:[%s2531_s17 + $0x3d0] sm:$0xff] %v601_v61  ;;  %v607_v0 = vld [vmem:[%s2526_s16 + $0x768] sm:$0xff]  ;;  %604 = vst [vmem:[%s2531_s17 + $0x3d8] sm:$0xff] %v603_v62  ;;  %v609_v2 = vld [vmem:[%s2526_s16 + $0x770] sm:$0xff] }
  0x4b   : > { %606 = vst [vmem:[%s2531_s17 + $0x3e0] sm:$0xff] %v605_v63  ;;  %608 = vst [vmem:[%s2531_s17 + $0x3e8] sm:$0xff] %v607_v0  ;;  %v611_v3 = vld [vmem:[%s2526_s16 + $0x778] sm:$0xff] }
  0x4c   : > { %610 = vst [vmem:[%s2531_s17 + $0x3f0] sm:$0xff] %v609_v2  ;;  %612 = vst [vmem:[%s2531_s17 + $0x3f8] sm:$0xff] %v611_v3 }
  0x4d PF: > { %p2172_p2 = scmp.ge.s32.totalorder %s2486_s8, 1  ;;  %p617_p3 = scmp.lt.s32.totalorder %s2486_s8, 3 }
  0x4f   : > { %p618_p4 = pnand %p2172_p2, %p617_p3 }
  0x50   : > { %2463 = vset.pattern.permute.xlu1 (!%p618_p4), %v2498_v1  ;;  %s624_s18 = sand.u32 (!%p618_p4), 1, %s2165_s9   ;;  %s2438_s21 = sshll.u32 (!%p618_p4), %s2478_s6, 7 }
  0x51   : > { %621 = sbr.rel (%p618_p4) target bundleno = 465 (0x1d1), region = 54  ;;  %s2173_s19 = sshll.u32 (!%p618_p4), %s624_s18, 10 }
  0x52   : > { %s2791_s20 = scalar_lea.vmem (!%p618_p4), [#allocation0], %s2173_s19  ;;  %s2861_s24 = scalar_lea.vmem (!%p618_p4), %s3065_s1, %s2438_s21 }
  0x53   : > { %v2177_v4 = vld [vmem:[%s2791_s20 + $0x10] sm:$0xff] (!%p618_p4)  ;;  %v644_v5 = vld [vmem:[%s2791_s20] sm:$0xff] (!%p618_p4)  ;;  %v2179_v6 = vld [vmem:[%s2791_s20 + $0x18] sm:$0xff] (!%p618_p4) }
  0x54   : > { %657 = vperm.xlu1 (!%p618_p4), %2463, %v2177_v4   ;;  %645 = vperm.xlu0 (!%p618_p4), %4, %v644_v5   ;;  %v2175_v7 = vld [vmem:[%s2791_s20 + $0x8] sm:$0xff] (!%p618_p4)  ;;  %v2181_v9 = vld [vmem:[%s2791_s20 + $0x20] sm:$0xff] (!%p618_p4)  ;;  %v2187_v10 = vld [vmem:[%s2791_s20 + $0x38] sm:$0xff] (!%p618_p4) }
  0x55   : > { %v2183_v8 = vld [vmem:[%s2791_s20 + $0x28] sm:$0xff] (!%p618_p4)  ;;  %v2185_v11 = vld [vmem:[%s2791_s20 + $0x30] sm:$0xff] (!%p618_p4)  ;;  %v2189_v13 = vld [vmem:[%s2791_s20 + $0x40] sm:$0xff] (!%p618_p4) }
  0x56   : > { %v2191_v12 = vld [vmem:[%s2791_s20 + $0x48] sm:$0xff] (!%p618_p4)  ;;  %v2195_v14 = vld [vmem:[%s2791_s20 + $0x58] sm:$0xff] (!%p618_p4)  ;;  %v2193_v15 = vld [vmem:[%s2791_s20 + $0x50] sm:$0xff] (!%p618_p4) }
  0x57   : > { %v2199_v16 = vld [vmem:[%s2791_s20 + $0x68] sm:$0xff] (!%p618_p4)  ;;  %v2197_v17 = vld [vmem:[%s2791_s20 + $0x60] sm:$0xff] (!%p618_p4)  ;;  %v2203_v18 = vld [vmem:[%s2791_s20 + $0x78] sm:$0xff] (!%p618_p4) }
  0x58   : > { %663 = vperm.xlu1 %2463, %v2179_v6   ;;  %651 = vperm.xlu0 %4, %v2175_v7   ;;  %v2201_v19 = vld [vmem:[%s2791_s20 + $0x70] sm:$0xff]  ;;  %v2207_v20 = vld [vmem:[%s2791_s20 + $0x88] sm:$0xff]  ;;  %v2205_v21 = vld [vmem:[%s2791_s20 + $0x80] sm:$0xff] }
  0x59   : > { %v2211_v22 = vld [vmem:[%s2791_s20 + $0x98] sm:$0xff]  ;;  %v2209_v23 = vld [vmem:[%s2791_s20 + $0x90] sm:$0xff]  ;;  %v2215_v24 = vld [vmem:[%s2791_s20 + $0xa8] sm:$0xff] }
  0x5a   : > { %v2213_v25 = vld [vmem:[%s2791_s20 + $0xa0] sm:$0xff]  ;;  %v2219_v26 = vld [vmem:[%s2791_s20 + $0xb8] sm:$0xff]  ;;  %v2217_v27 = vld [vmem:[%s2791_s20 + $0xb0] sm:$0xff] }
  0x5b   : > { %v2223_v28 = vld [vmem:[%s2791_s20 + $0xc8] sm:$0xff]  ;;  %v2221_v29 = vld [vmem:[%s2791_s20 + $0xc0] sm:$0xff]  ;;  %v2227_v30 = vld [vmem:[%s2791_s20 + $0xd8] sm:$0xff] }
  0x5c   : > { %675 = vperm.xlu1 %2463, %v2183_v8   ;;  %669 = vperm.xlu0 %4, %v2181_v9   ;;  %v2225_v31 = vld [vmem:[%s2791_s20 + $0xd0] sm:$0xff]  ;;  %v2231_v32 = vld [vmem:[%s2791_s20 + $0xe8] sm:$0xff]  ;;  %v2229_v33 = vld [vmem:[%s2791_s20 + $0xe0] sm:$0xff] }
  0x5d   : > { %v2235_v34 = vld [vmem:[%s2791_s20 + $0xf8] sm:$0xff]  ;;  %v2233_v35 = vld [vmem:[%s2791_s20 + $0xf0] sm:$0xff]  ;;  %v2239_v36 = vld [vmem:[%s2791_s20 + $0x108] sm:$0xff] }
  0x5e   : > { %v2237_v37 = vld [vmem:[%s2791_s20 + $0x100] sm:$0xff]  ;;  %v2243_v38 = vld [vmem:[%s2791_s20 + $0x118] sm:$0xff]  ;;  %v2241_v39 = vld [vmem:[%s2791_s20 + $0x110] sm:$0xff] }
  0x5f   : > { %v2247_v40 = vld [vmem:[%s2791_s20 + $0x128] sm:$0xff]  ;;  %v2245_v41 = vld [vmem:[%s2791_s20 + $0x120] sm:$0xff]  ;;  %v2251_v42 = vld [vmem:[%s2791_s20 + $0x138] sm:$0xff] }
  0x60   : > { %687 = vperm.xlu1 %2463, %v2187_v10   ;;  %681 = vperm.xlu0 %4, %v2185_v11   ;;  %v2249_v43 = vld [vmem:[%s2791_s20 + $0x130] sm:$0xff]  ;;  %v2255_v44 = vld [vmem:[%s2791_s20 + $0x148] sm:$0xff]  ;;  %v2253_v45 = vld [vmem:[%s2791_s20 + $0x140] sm:$0xff] }
  0x61   : > { %v2259_v46 = vld [vmem:[%s2791_s20 + $0x158] sm:$0xff]  ;;  %v2257_v47 = vld [vmem:[%s2791_s20 + $0x150] sm:$0xff]  ;;  %v2263_v48 = vld [vmem:[%s2791_s20 + $0x168] sm:$0xff] }
  0x62   : > { %v2261_v49 = vld [vmem:[%s2791_s20 + $0x160] sm:$0xff]  ;;  %v2267_v50 = vld [vmem:[%s2791_s20 + $0x178] sm:$0xff]  ;;  %v2265_v51 = vld [vmem:[%s2791_s20 + $0x170] sm:$0xff] }
  0x63   : > { %v2271_v52 = vld [vmem:[%s2791_s20 + $0x188] sm:$0xff]  ;;  %v2269_v53 = vld [vmem:[%s2791_s20 + $0x180] sm:$0xff]  ;;  %v2275_v54 = vld [vmem:[%s2791_s20 + $0x198] sm:$0xff] }
  0x64   : > { %699 = vperm.xlu1 %2463, %v2191_v12   ;;  %693 = vperm.xlu0 %4, %v2189_v13   ;;  %v2273_v55 = vld [vmem:[%s2791_s20 + $0x190] sm:$0xff]  ;;  %v2279_v56 = vld [vmem:[%s2791_s20 + $0x1a8] sm:$0xff]  ;;  %v2277_v57 = vld [vmem:[%s2791_s20 + $0x1a0] sm:$0xff] }
  0x65   : > { %v2283_v58 = vld [vmem:[%s2791_s20 + $0x1b8] sm:$0xff]  ;;  %v2281_v59 = vld [vmem:[%s2791_s20 + $0x1b0] sm:$0xff]  ;;  %v2287_v60 = vld [vmem:[%s2791_s20 + $0x1c8] sm:$0xff] }
  0x66   : > { %v2285_v61 = vld [vmem:[%s2791_s20 + $0x1c0] sm:$0xff]  ;;  %v2291_v62 = vld [vmem:[%s2791_s20 + $0x1d8] sm:$0xff]  ;;  %v2289_v63 = vld [vmem:[%s2791_s20 + $0x1d0] sm:$0xff] }
  0x67   : > { %v2295_v0 = vld [vmem:[%s2791_s20 + $0x1e8] sm:$0xff]  ;;  %v2293_v2 = vld [vmem:[%s2791_s20 + $0x1e0] sm:$0xff]  ;;  %v2299_v3 = vld [vmem:[%s2791_s20 + $0x1f8] sm:$0xff] }
  0x68   : > { %711 = vperm.xlu1 %2463, %v2195_v14   ;;  %705 = vperm.xlu0 %4, %v2193_v15   ;;  %v2297_v4 = vld [vmem:[%s2791_s20 + $0x1f0] sm:$0xff]  ;;  %v2303_v5 = vld [vmem:[%s2791_s20 + $0x208] sm:$0xff]  ;;  %v2301_v6 = vld [vmem:[%s2791_s20 + $0x200] sm:$0xff] }
  0x69   : > { %v2307_v9 = vld [vmem:[%s2791_s20 + $0x218] sm:$0xff]  ;;  %v2305_v10 = vld [vmem:[%s2791_s20 + $0x210] sm:$0xff]  ;;  %v2311_v13 = vld [vmem:[%s2791_s20 + $0x228] sm:$0xff] }
  0x6a   : > { %v2309_v14 = vld [vmem:[%s2791_s20 + $0x220] sm:$0xff] }
  0x6c   : > { %723 = vperm.xlu1 %2463, %v2199_v16   ;;  %717 = vperm.xlu0 %4, %v2197_v17   ;;  %v2315_v17 = vld [vmem:[%s2791_s20 + $0x238] sm:$0xff] }
  0x70   : > { %735 = vperm.xlu1 %2463, %v2203_v18   ;;  %729 = vperm.xlu0 %4, %v2201_v19   ;;  %v2313_v18 = vld [vmem:[%s2791_s20 + $0x230] sm:$0xff] }
  0x74   : > { %747 = vperm.xlu1 %2463, %v2207_v20   ;;  %741 = vperm.xlu0 %4, %v2205_v21   ;;  %v2319_v21 = vld [vmem:[%s2791_s20 + $0x248] sm:$0xff] }
  0x78   : > { %759 = vperm.xlu1 %2463, %v2211_v22   ;;  %753 = vperm.xlu0 %4, %v2209_v23   ;;  %v2317_v22 = vld [vmem:[%s2791_s20 + $0x240] sm:$0xff] }
  0x7c   : > { %771 = vperm.xlu1 %2463, %v2215_v24   ;;  %765 = vperm.xlu0 %4, %v2213_v25   ;;  %v2323_v25 = vld [vmem:[%s2791_s20 + $0x258] sm:$0xff] }
  0x80   : > { %783 = vperm.xlu1 %2463, %v2219_v26   ;;  %777 = vperm.xlu0 %4, %v2217_v27   ;;  %v2321_v26 = vld [vmem:[%s2791_s20 + $0x250] sm:$0xff] }
  0x84   : > { %795 = vperm.xlu1 %2463, %v2223_v28   ;;  %789 = vperm.xlu0 %4, %v2221_v29   ;;  %v2327_v29 = vld [vmem:[%s2791_s20 + $0x268] sm:$0xff] }
  0x88   : > { %807 = vperm.xlu1 %2463, %v2227_v30   ;;  %801 = vperm.xlu0 %4, %v2225_v31   ;;  %v2325_v30 = vld [vmem:[%s2791_s20 + $0x260] sm:$0xff] }
  0x8c   : > { %819 = vperm.xlu1 %2463, %v2231_v32   ;;  %813 = vperm.xlu0 %4, %v2229_v33   ;;  %v2331_v33 = vld [vmem:[%s2791_s20 + $0x278] sm:$0xff] }
  0x90   : > { %831 = vperm.xlu1 %2463, %v2235_v34   ;;  %825 = vperm.xlu0 %4, %v2233_v35   ;;  %v2329_v34 = vld [vmem:[%s2791_s20 + $0x270] sm:$0xff] }
  0x94   : > { %843 = vperm.xlu1 %2463, %v2239_v36   ;;  %837 = vperm.xlu0 %4, %v2237_v37   ;;  %v2335_v37 = vld [vmem:[%s2791_s20 + $0x288] sm:$0xff] }
  0x98   : > { %855 = vperm.xlu1 %2463, %v2243_v38   ;;  %849 = vperm.xlu0 %4, %v2241_v39   ;;  %v2333_v38 = vld [vmem:[%s2791_s20 + $0x280] sm:$0xff] }
  0x9c   : > { %867 = vperm.xlu1 %2463, %v2247_v40   ;;  %861 = vperm.xlu0 %4, %v2245_v41   ;;  %v2339_v41 = vld [vmem:[%s2791_s20 + $0x298] sm:$0xff] }
  0xa0   : > { %879 = vperm.xlu1 %2463, %v2251_v42   ;;  %873 = vperm.xlu0 %4, %v2249_v43   ;;  %v2337_v42 = vld [vmem:[%s2791_s20 + $0x290] sm:$0xff] }
  0xa4   : > { %891 = vperm.xlu1 %2463, %v2255_v44   ;;  %885 = vperm.xlu0 %4, %v2253_v45   ;;  %v2343_v45 = vld [vmem:[%s2791_s20 + $0x2a8] sm:$0xff] }
  0xa8   : > { %903 = vperm.xlu1 %2463, %v2259_v46   ;;  %897 = vperm.xlu0 %4, %v2257_v47   ;;  %v2341_v46 = vld [vmem:[%s2791_s20 + $0x2a0] sm:$0xff] }
  0xac   : > { %915 = vperm.xlu1 %2463, %v2263_v48   ;;  %909 = vperm.xlu0 %4, %v2261_v49   ;;  %v2347_v49 = vld [vmem:[%s2791_s20 + $0x2b8] sm:$0xff] }
  0xb0   : > { %927 = vperm.xlu1 %2463, %v2267_v50   ;;  %921 = vperm.xlu0 %4, %v2265_v51   ;;  %v2345_v50 = vld [vmem:[%s2791_s20 + $0x2b0] sm:$0xff] }
  0xb4   : > { %939 = vperm.xlu1 %2463, %v2271_v52   ;;  %933 = vperm.xlu0 %4, %v2269_v53   ;;  %v2351_v53 = vld [vmem:[%s2791_s20 + $0x2c8] sm:$0xff] }
  0xb8   : > { %951 = vperm.xlu1 %2463, %v2275_v54   ;;  %945 = vperm.xlu0 %4, %v2273_v55   ;;  %v2349_v54 = vld [vmem:[%s2791_s20 + $0x2c0] sm:$0xff] }
  0xbc   : > { %963 = vperm.xlu1 %2463, %v2279_v56   ;;  %957 = vperm.xlu0 %4, %v2277_v57   ;;  %v2355_v57 = vld [vmem:[%s2791_s20 + $0x2d8] sm:$0xff] }
  0xc0   : > { %975 = vperm.xlu1 %2463, %v2283_v58   ;;  %969 = vperm.xlu0 %4, %v2281_v59   ;;  %v2353_v58 = vld [vmem:[%s2791_s20 + $0x2d0] sm:$0xff] }
  0xc4   : > { %987 = vperm.xlu1 %2463, %v2287_v60   ;;  %981 = vperm.xlu0 %4, %v2285_v61   ;;  %v2359_v61 = vld [vmem:[%s2791_s20 + $0x2e8] sm:$0xff] }
  0xc8   : > { %999 = vperm.xlu1 %2463, %v2291_v62   ;;  %993 = vperm.xlu0 %4, %v2289_v63   ;;  %v2357_v62 = vld [vmem:[%s2791_s20 + $0x2e0] sm:$0xff] }
  0xcc   : > { %1011 = vperm.xlu1 %2463, %v2295_v0   ;;  %1005 = vperm.xlu0 %4, %v2293_v2   ;;  %v2363_v2 = vld [vmem:[%s2791_s20 + $0x2f8] sm:$0xff] }
  0xd0   : > { %1023 = vperm.xlu1 %2463, %v2299_v3   ;;  %1017 = vperm.xlu0 %4, %v2297_v4   ;;  %v2361_v3 = vld [vmem:[%s2791_s20 + $0x2f0] sm:$0xff] }
  0xd3   : > { %v658_v7 = vpop.permute.xlu1 %657  ;;  %v646_v8 = vpop.permute.xlu0 %645 }
  0xd4   : > { %1713 = vst [vmem:[%s2861_s24 + $0x10] sm:$0xff] %v658_v7  ;;  %1709 = vst [vmem:[%s2861_s24] sm:$0xff] %v646_v8  ;;  %1035 = vperm.xlu1 %2463, %v2303_v5   ;;  %1029 = vperm.xlu0 %4, %v2301_v6   ;;  %v2367_v6 = vld [vmem:[%s2791_s20 + $0x308] sm:$0xff]  ;;  %v2365_v7 = vld [vmem:[%s2791_s20 + $0x300] sm:$0xff] }
  0xd7   : > { %v664_v11 = vpop.permute.xlu1 %663  ;;  %v652_v12 = vpop.permute.xlu0 %651 }
  0xd8   : > { %1715 = vst [vmem:[%s2861_s24 + $0x18] sm:$0xff] %v664_v11  ;;  %1711 = vst [vmem:[%s2861_s24 + $0x8] sm:$0xff] %v652_v12  ;;  %1047 = vperm.xlu1 %2463, %v2307_v9   ;;  %1041 = vperm.xlu0 %4, %v2305_v10   ;;  %v2371_v10 = vld [vmem:[%s2791_s20 + $0x318] sm:$0xff]  ;;  %v2369_v11 = vld [vmem:[%s2791_s20 + $0x310] sm:$0xff] }
  0xdb   : > { %v676_v15 = vpop.permute.xlu1 %675  ;;  %v670_v16 = vpop.permute.xlu0 %669 }
  0xdc   : > { %1719 = vst [vmem:[%s2861_s24 + $0x28] sm:$0xff] %v676_v15  ;;  %1717 = vst [vmem:[%s2861_s24 + $0x20] sm:$0xff] %v670_v16  ;;  %1059 = vperm.xlu1 %2463, %v2311_v13   ;;  %1053 = vperm.xlu0 %4, %v2309_v14   ;;  %v2375_v14 = vld [vmem:[%s2791_s20 + $0x328] sm:$0xff]  ;;  %v2373_v15 = vld [vmem:[%s2791_s20 + $0x320] sm:$0xff] }
  0xdf   : > { %v688_v19 = vpop.permute.xlu1 %687  ;;  %v682_v20 = vpop.permute.xlu0 %681 }
  0xe0   : > { %1723 = vst [vmem:[%s2861_s24 + $0x38] sm:$0xff] %v688_v19  ;;  %1721 = vst [vmem:[%s2861_s24 + $0x30] sm:$0xff] %v682_v20  ;;  %1071 = vperm.xlu1 %2463, %v2315_v17   ;;  %1065 = vperm.xlu0 %4, %v2313_v18   ;;  %v2379_v18 = vld [vmem:[%s2791_s20 + $0x338] sm:$0xff]  ;;  %v2377_v19 = vld [vmem:[%s2791_s20 + $0x330] sm:$0xff] }
  0xe3   : > { %v700_v23 = vpop.permute.xlu1 %699  ;;  %v694_v24 = vpop.permute.xlu0 %693 }
  0xe4   : > { %1727 = vst [vmem:[%s2861_s24 + $0x48] sm:$0xff] %v700_v23  ;;  %1725 = vst [vmem:[%s2861_s24 + $0x40] sm:$0xff] %v694_v24  ;;  %1083 = vperm.xlu1 %2463, %v2319_v21   ;;  %1077 = vperm.xlu0 %4, %v2317_v22   ;;  %v2383_v22 = vld [vmem:[%s2791_s20 + $0x348] sm:$0xff]  ;;  %v2381_v23 = vld [vmem:[%s2791_s20 + $0x340] sm:$0xff] }
  0xe7   : > { %v712_v27 = vpop.permute.xlu1 %711  ;;  %v706_v28 = vpop.permute.xlu0 %705 }
  0xe8   : > { %1731 = vst [vmem:[%s2861_s24 + $0x58] sm:$0xff] %v712_v27  ;;  %1729 = vst [vmem:[%s2861_s24 + $0x50] sm:$0xff] %v706_v28  ;;  %1095 = vperm.xlu1 %2463, %v2323_v25   ;;  %1089 = vperm.xlu0 %4, %v2321_v26   ;;  %v2387_v26 = vld [vmem:[%s2791_s20 + $0x358] sm:$0xff]  ;;  %v2385_v27 = vld [vmem:[%s2791_s20 + $0x350] sm:$0xff] }
  0xeb   : > { %v724_v31 = vpop.permute.xlu1 %723  ;;  %v718_v32 = vpop.permute.xlu0 %717 }
  0xec   : > { %1735 = vst [vmem:[%s2861_s24 + $0x68] sm:$0xff] %v724_v31  ;;  %1733 = vst [vmem:[%s2861_s24 + $0x60] sm:$0xff] %v718_v32  ;;  %1107 = vperm.xlu1 %2463, %v2327_v29   ;;  %1101 = vperm.xlu0 %4, %v2325_v30   ;;  %v2391_v30 = vld [vmem:[%s2791_s20 + $0x368] sm:$0xff]  ;;  %v2389_v31 = vld [vmem:[%s2791_s20 + $0x360] sm:$0xff] }
  0xef   : > { %v736_v35 = vpop.permute.xlu1 %735  ;;  %v730_v36 = vpop.permute.xlu0 %729 }
  0xf0   : > { %1739 = vst [vmem:[%s2861_s24 + $0x78] sm:$0xff] %v736_v35  ;;  %1737 = vst [vmem:[%s2861_s24 + $0x70] sm:$0xff] %v730_v36  ;;  %1119 = vperm.xlu1 %2463, %v2331_v33   ;;  %1113 = vperm.xlu0 %4, %v2329_v34   ;;  %v2395_v34 = vld [vmem:[%s2791_s20 + $0x378] sm:$0xff]  ;;  %v2393_v35 = vld [vmem:[%s2791_s20 + $0x370] sm:$0xff] }
  0xf3   : > { %v748_v39 = vpop.permute.xlu1 %747  ;;  %v742_v40 = vpop.permute.xlu0 %741 }
  0xf4   : > { %1743 = vst [vmem:[%s2861_s24 + $0x108] sm:$0xff] %v748_v39  ;;  %1741 = vst [vmem:[%s2861_s24 + $0x100] sm:$0xff] %v742_v40  ;;  %1131 = vperm.xlu1 %2463, %v2335_v37   ;;  %1125 = vperm.xlu0 %4, %v2333_v38   ;;  %v2399_v38 = vld [vmem:[%s2791_s20 + $0x388] sm:$0xff]  ;;  %v2397_v39 = vld [vmem:[%s2791_s20 + $0x380] sm:$0xff] }
  0xf7   : > { %v760_v43 = vpop.permute.xlu1 %759  ;;  %v754_v44 = vpop.permute.xlu0 %753 }
  0xf8   : > { %1747 = vst [vmem:[%s2861_s24 + $0x118] sm:$0xff] %v760_v43  ;;  %1745 = vst [vmem:[%s2861_s24 + $0x110] sm:$0xff] %v754_v44  ;;  %1143 = vperm.xlu1 %2463, %v2339_v41   ;;  %1137 = vperm.xlu0 %4, %v2337_v42   ;;  %v2403_v42 = vld [vmem:[%s2791_s20 + $0x398] sm:$0xff]  ;;  %v2401_v43 = vld [vmem:[%s2791_s20 + $0x390] sm:$0xff] }
  0xfb   : > { %v772_v47 = vpop.permute.xlu1 %771  ;;  %v766_v48 = vpop.permute.xlu0 %765 }
  0xfc   : > { %1751 = vst [vmem:[%s2861_s24 + $0x128] sm:$0xff] %v772_v47  ;;  %1749 = vst [vmem:[%s2861_s24 + $0x120] sm:$0xff] %v766_v48  ;;  %1155 = vperm.xlu1 %2463, %v2343_v45   ;;  %1149 = vperm.xlu0 %4, %v2341_v46   ;;  %v2407_v46 = vld [vmem:[%s2791_s20 + $0x3a8] sm:$0xff]  ;;  %v2405_v47 = vld [vmem:[%s2791_s20 + $0x3a0] sm:$0xff] }
  0xff   : > { %v784_v51 = vpop.permute.xlu1 %783  ;;  %v778_v52 = vpop.permute.xlu0 %777 }
 0x100   : > { %1755 = vst [vmem:[%s2861_s24 + $0x138] sm:$0xff] %v784_v51  ;;  %1753 = vst [vmem:[%s2861_s24 + $0x130] sm:$0xff] %v778_v52  ;;  %1167 = vperm.xlu1 %2463, %v2347_v49   ;;  %1161 = vperm.xlu0 %4, %v2345_v50   ;;  %v2411_v50 = vld [vmem:[%s2791_s20 + $0x3b8] sm:$0xff]  ;;  %v2409_v51 = vld [vmem:[%s2791_s20 + $0x3b0] sm:$0xff] }
 0x103   : > { %v796_v55 = vpop.permute.xlu1 %795  ;;  %v790_v56 = vpop.permute.xlu0 %789 }
 0x104   : > { %1759 = vst [vmem:[%s2861_s24 + $0x148] sm:$0xff] %v796_v55  ;;  %1757 = vst [vmem:[%s2861_s24 + $0x140] sm:$0xff] %v790_v56  ;;  %1179 = vperm.xlu1 %2463, %v2351_v53   ;;  %1173 = vperm.xlu0 %4, %v2349_v54   ;;  %v2415_v54 = vld [vmem:[%s2791_s20 + $0x3c8] sm:$0xff]  ;;  %v2413_v55 = vld [vmem:[%s2791_s20 + $0x3c0] sm:$0xff] }
 0x107   : > { %v808_v59 = vpop.permute.xlu1 %807  ;;  %v802_v60 = vpop.permute.xlu0 %801 }
 0x108   : > { %1763 = vst [vmem:[%s2861_s24 + $0x158] sm:$0xff] %v808_v59  ;;  %1761 = vst [vmem:[%s2861_s24 + $0x150] sm:$0xff] %v802_v60  ;;  %1191 = vperm.xlu1 %2463, %v2355_v57   ;;  %1185 = vperm.xlu0 %4, %v2353_v58   ;;  %v2419_v58 = vld [vmem:[%s2791_s20 + $0x3d8] sm:$0xff]  ;;  %v2417_v59 = vld [vmem:[%s2791_s20 + $0x3d0] sm:$0xff] }
 0x10b   : > { %v820_v63 = vpop.permute.xlu1 %819  ;;  %v814_v0 = vpop.permute.xlu0 %813 }
 0x10c   : > { %1767 = vst [vmem:[%s2861_s24 + $0x168] sm:$0xff] %v820_v63  ;;  %1765 = vst [vmem:[%s2861_s24 + $0x160] sm:$0xff] %v814_v0  ;;  %1203 = vperm.xlu1 %2463, %v2359_v61   ;;  %1197 = vperm.xlu0 %4, %v2357_v62   ;;  %v2423_v62 = vld [vmem:[%s2791_s20 + $0x3e8] sm:$0xff]  ;;  %v2421_v63 = vld [vmem:[%s2791_s20 + $0x3e0] sm:$0xff] }
 0x10f   : > { %v832_v4 = vpop.permute.xlu1 %831  ;;  %v826_v5 = vpop.permute.xlu0 %825 }
 0x110   : > { %1771 = vst [vmem:[%s2861_s24 + $0x178] sm:$0xff] %v832_v4  ;;  %1769 = vst [vmem:[%s2861_s24 + $0x170] sm:$0xff] %v826_v5  ;;  %1215 = vperm.xlu1 %2463, %v2363_v2   ;;  %1209 = vperm.xlu0 %4, %v2361_v3   ;;  %v2427_v3 = vld [vmem:[%s2791_s20 + $0x3f8] sm:$0xff]  ;;  %v2425_v4 = vld [vmem:[%s2791_s20 + $0x3f0] sm:$0xff] }
 0x113   : > { %v844_v8 = vpop.permute.xlu1 %843  ;;  %v838_v9 = vpop.permute.xlu0 %837 }
 0x114   : > { %1775 = vst [vmem:[%s2861_s24 + $0x208] sm:$0xff] %v844_v8  ;;  %1773 = vst [vmem:[%s2861_s24 + $0x200] sm:$0xff] %v838_v9  ;;  %1227 = vperm.xlu1 %2463, %v2367_v6   ;;  %1221 = vperm.xlu0 %4, %v2365_v7  }
 0x117   : > { %v856_v12 = vpop.permute.xlu1 %855  ;;  %v850_v13 = vpop.permute.xlu0 %849 }
 0x118   : > { %1779 = vst [vmem:[%s2861_s24 + $0x218] sm:$0xff] %v856_v12  ;;  %1777 = vst [vmem:[%s2861_s24 + $0x210] sm:$0xff] %v850_v13  ;;  %1239 = vperm.xlu1 %2463, %v2371_v10   ;;  %1233 = vperm.xlu0 %4, %v2369_v11  }
 0x11b   : > { %v868_v16 = vpop.permute.xlu1 %867  ;;  %v862_v17 = vpop.permute.xlu0 %861 }
 0x11c   : > { %1783 = vst [vmem:[%s2861_s24 + $0x228] sm:$0xff] %v868_v16  ;;  %1781 = vst [vmem:[%s2861_s24 + $0x220] sm:$0xff] %v862_v17  ;;  %1251 = vperm.xlu1 %2463, %v2375_v14   ;;  %1245 = vperm.xlu0 %4, %v2373_v15  }
 0x11f   : > { %v880_v20 = vpop.permute.xlu1 %879  ;;  %v874_v21 = vpop.permute.xlu0 %873 }
 0x120   : > { %1787 = vst [vmem:[%s2861_s24 + $0x238] sm:$0xff] %v880_v20  ;;  %1785 = vst [vmem:[%s2861_s24 + $0x230] sm:$0xff] %v874_v21  ;;  %1263 = vperm.xlu1 %2463, %v2379_v18   ;;  %1257 = vperm.xlu0 %4, %v2377_v19  }
 0x123   : > { %v892_v24 = vpop.permute.xlu1 %891  ;;  %v886_v25 = vpop.permute.xlu0 %885 }
 0x124   : > { %1791 = vst [vmem:[%s2861_s24 + $0x248] sm:$0xff] %v892_v24  ;;  %1789 = vst [vmem:[%s2861_s24 + $0x240] sm:$0xff] %v886_v25  ;;  %1275 = vperm.xlu1 %2463, %v2383_v22   ;;  %1269 = vperm.xlu0 %4, %v2381_v23  }
 0x127   : > { %v904_v28 = vpop.permute.xlu1 %903  ;;  %v898_v29 = vpop.permute.xlu0 %897 }
 0x128   : > { %1795 = vst [vmem:[%s2861_s24 + $0x258] sm:$0xff] %v904_v28  ;;  %1793 = vst [vmem:[%s2861_s24 + $0x250] sm:$0xff] %v898_v29  ;;  %1287 = vperm.xlu1 %2463, %v2387_v26   ;;  %1281 = vperm.xlu0 %4, %v2385_v27  }
 0x12b   : > { %v916_v32 = vpop.permute.xlu1 %915  ;;  %v910_v33 = vpop.permute.xlu0 %909 }
 0x12c   : > { %1799 = vst [vmem:[%s2861_s24 + $0x268] sm:$0xff] %v916_v32  ;;  %1797 = vst [vmem:[%s2861_s24 + $0x260] sm:$0xff] %v910_v33  ;;  %1299 = vperm.xlu1 %2463, %v2391_v30   ;;  %1293 = vperm.xlu0 %4, %v2389_v31  }
 0x12f   : > { %v928_v36 = vpop.permute.xlu1 %927  ;;  %v922_v37 = vpop.permute.xlu0 %921 }
 0x130   : > { %1803 = vst [vmem:[%s2861_s24 + $0x278] sm:$0xff] %v928_v36  ;;  %1801 = vst [vmem:[%s2861_s24 + $0x270] sm:$0xff] %v922_v37  ;;  %1311 = vperm.xlu1 %2463, %v2395_v34   ;;  %1305 = vperm.xlu0 %4, %v2393_v35  }
 0x133   : > { %v940_v40 = vpop.permute.xlu1 %939  ;;  %v934_v41 = vpop.permute.xlu0 %933 }
 0x134   : > { %1807 = vst [vmem:[%s2861_s24 + $0x308] sm:$0xff] %v940_v40  ;;  %1805 = vst [vmem:[%s2861_s24 + $0x300] sm:$0xff] %v934_v41  ;;  %1323 = vperm.xlu1 %2463, %v2399_v38   ;;  %1317 = vperm.xlu0 %4, %v2397_v39  }
 0x137   : > { %v952_v44 = vpop.permute.xlu1 %951  ;;  %v946_v45 = vpop.permute.xlu0 %945 }
 0x138   : > { %1811 = vst [vmem:[%s2861_s24 + $0x318] sm:$0xff] %v952_v44  ;;  %1809 = vst [vmem:[%s2861_s24 + $0x310] sm:$0xff] %v946_v45  ;;  %1335 = vperm.xlu1 %2463, %v2403_v42   ;;  %1329 = vperm.xlu0 %4, %v2401_v43  }
 0x13b   : > { %v964_v48 = vpop.permute.xlu1 %963  ;;  %v958_v49 = vpop.permute.xlu0 %957 }
 0x13c   : > { %1815 = vst [vmem:[%s2861_s24 + $0x328] sm:$0xff] %v964_v48  ;;  %1813 = vst [vmem:[%s2861_s24 + $0x320] sm:$0xff] %v958_v49  ;;  %1347 = vperm.xlu1 %2463, %v2407_v46   ;;  %1341 = vperm.xlu0 %4, %v2405_v47  }
 0x13f   : > { %v976_v52 = vpop.permute.xlu1 %975  ;;  %v970_v53 = vpop.permute.xlu0 %969 }
 0x140   : > { %1819 = vst [vmem:[%s2861_s24 + $0x338] sm:$0xff] %v976_v52  ;;  %1817 = vst [vmem:[%s2861_s24 + $0x330] sm:$0xff] %v970_v53  ;;  %1359 = vperm.xlu1 %2463, %v2411_v50   ;;  %1353 = vperm.xlu0 %4, %v2409_v51  }
 0x143   : > { %v988_v56 = vpop.permute.xlu1 %987  ;;  %v982_v57 = vpop.permute.xlu0 %981 }
 0x144   : > { %1823 = vst [vmem:[%s2861_s24 + $0x348] sm:$0xff] %v988_v56  ;;  %1821 = vst [vmem:[%s2861_s24 + $0x340] sm:$0xff] %v982_v57  ;;  %1371 = vperm.xlu1 %2463, %v2415_v54   ;;  %1365 = vperm.xlu0 %4, %v2413_v55  }
 0x147   : > { %v1000_v60 = vpop.permute.xlu1 %999  ;;  %v994_v61 = vpop.permute.xlu0 %993 }
 0x148   : > { %1827 = vst [vmem:[%s2861_s24 + $0x358] sm:$0xff] %v1000_v60  ;;  %1825 = vst [vmem:[%s2861_s24 + $0x350] sm:$0xff] %v994_v61  ;;  %1383 = vperm.xlu1 %2463, %v2419_v58   ;;  %1377 = vperm.xlu0 %4, %v2417_v59  }
 0x14b   : > { %v1012_v0 = vpop.permute.xlu1 %1011  ;;  %v1006_v2 = vpop.permute.xlu0 %1005 }
 0x14c   : > { %1831 = vst [vmem:[%s2861_s24 + $0x368] sm:$0xff] %v1012_v0  ;;  %1829 = vst [vmem:[%s2861_s24 + $0x360] sm:$0xff] %v1006_v2  ;;  %1395 = vperm.xlu1 %2463, %v2423_v62   ;;  %1389 = vperm.xlu0 %4, %v2421_v63  }
 0x14f   : > { %v1024_v5 = vpop.permute.xlu1 %1023  ;;  %v1018_v6 = vpop.permute.xlu0 %1017 }
 0x150   : > { %1835 = vst [vmem:[%s2861_s24 + $0x378] sm:$0xff] %v1024_v5  ;;  %1833 = vst [vmem:[%s2861_s24 + $0x370] sm:$0xff] %v1018_v6  ;;  %1407 = vperm.xlu1 %2463, %v2427_v3   ;;  %1401 = vperm.xlu0 %4, %v2425_v4  }
 0x153   : > { %v1036_v7 = vpop.permute.xlu1 %1035  ;;  %v1030_v8 = vpop.permute.xlu0 %1029 }
 0x154   : > { %1839 = vst [vmem:[%s2861_s24 + $0x408] sm:$0xff] %v1036_v7  ;;  %1837 = vst [vmem:[%s2861_s24 + $0x400] sm:$0xff] %v1030_v8 }
 0x157   : > { %v1048_v9 = vpop.permute.xlu1 %1047  ;;  %v1042_v10 = vpop.permute.xlu0 %1041 }
 0x158   : > { %1843 = vst [vmem:[%s2861_s24 + $0x418] sm:$0xff] %v1048_v9  ;;  %1841 = vst [vmem:[%s2861_s24 + $0x410] sm:$0xff] %v1042_v10 }
 0x15b   : > { %v1060_v11 = vpop.permute.xlu1 %1059  ;;  %v1054_v12 = vpop.permute.xlu0 %1053 }
 0x15c   : > { %1847 = vst [vmem:[%s2861_s24 + $0x428] sm:$0xff] %v1060_v11  ;;  %1845 = vst [vmem:[%s2861_s24 + $0x420] sm:$0xff] %v1054_v12 }
 0x15f   : > { %v1072_v13 = vpop.permute.xlu1 %1071  ;;  %v1066_v14 = vpop.permute.xlu0 %1065 }
 0x160   : > { %1851 = vst [vmem:[%s2861_s24 + $0x438] sm:$0xff] %v1072_v13  ;;  %1849 = vst [vmem:[%s2861_s24 + $0x430] sm:$0xff] %v1066_v14 }
 0x163   : > { %v1084_v15 = vpop.permute.xlu1 %1083  ;;  %v1078_v16 = vpop.permute.xlu0 %1077 }
 0x164   : > { %1855 = vst [vmem:[%s2861_s24 + $0x448] sm:$0xff] %v1084_v15  ;;  %1853 = vst [vmem:[%s2861_s24 + $0x440] sm:$0xff] %v1078_v16 }
 0x167   : > { %v1096_v17 = vpop.permute.xlu1 %1095  ;;  %v1090_v18 = vpop.permute.xlu0 %1089 }
 0x168   : > { %1859 = vst [vmem:[%s2861_s24 + $0x458] sm:$0xff] %v1096_v17  ;;  %1857 = vst [vmem:[%s2861_s24 + $0x450] sm:$0xff] %v1090_v18 }
 0x16b   : > { %v1108_v19 = vpop.permute.xlu1 %1107  ;;  %v1102_v20 = vpop.permute.xlu0 %1101 }
 0x16c   : > { %1863 = vst [vmem:[%s2861_s24 + $0x468] sm:$0xff] %v1108_v19  ;;  %1861 = vst [vmem:[%s2861_s24 + $0x460] sm:$0xff] %v1102_v20 }
 0x16f   : > { %v1120_v21 = vpop.permute.xlu1 %1119  ;;  %v1114_v22 = vpop.permute.xlu0 %1113 }
 0x170   : > { %1867 = vst [vmem:[%s2861_s24 + $0x478] sm:$0xff] %v1120_v21  ;;  %1865 = vst [vmem:[%s2861_s24 + $0x470] sm:$0xff] %v1114_v22 }
 0x173   : > { %v1132_v23 = vpop.permute.xlu1 %1131  ;;  %v1126_v24 = vpop.permute.xlu0 %1125 }
 0x174   : > { %1871 = vst [vmem:[%s2861_s24 + $0x508] sm:$0xff] %v1132_v23  ;;  %1869 = vst [vmem:[%s2861_s24 + $0x500] sm:$0xff] %v1126_v24 }
 0x177   : > { %v1144_v25 = vpop.permute.xlu1 %1143  ;;  %v1138_v26 = vpop.permute.xlu0 %1137 }
 0x178   : > { %1875 = vst [vmem:[%s2861_s24 + $0x518] sm:$0xff] %v1144_v25  ;;  %1873 = vst [vmem:[%s2861_s24 + $0x510] sm:$0xff] %v1138_v26 }
 0x17b   : > { %v1156_v27 = vpop.permute.xlu1 %1155  ;;  %v1150_v28 = vpop.permute.xlu0 %1149 }
 0x17c   : > { %1879 = vst [vmem:[%s2861_s24 + $0x528] sm:$0xff] %v1156_v27  ;;  %1877 = vst [vmem:[%s2861_s24 + $0x520] sm:$0xff] %v1150_v28 }
 0x17f   : > { %v1168_v29 = vpop.permute.xlu1 %1167  ;;  %v1162_v30 = vpop.permute.xlu0 %1161 }
 0x180   : > { %1883 = vst [vmem:[%s2861_s24 + $0x538] sm:$0xff] %v1168_v29  ;;  %1881 = vst [vmem:[%s2861_s24 + $0x530] sm:$0xff] %v1162_v30 }
 0x183   : > { %v1180_v31 = vpop.permute.xlu1 %1179  ;;  %v1174_v32 = vpop.permute.xlu0 %1173 }
 0x184   : > { %1887 = vst [vmem:[%s2861_s24 + $0x548] sm:$0xff] %v1180_v31  ;;  %1885 = vst [vmem:[%s2861_s24 + $0x540] sm:$0xff] %v1174_v32 }
 0x187   : > { %v1192_v33 = vpop.permute.xlu1 %1191  ;;  %v1186_v34 = vpop.permute.xlu0 %1185 }
 0x188   : > { %1891 = vst [vmem:[%s2861_s24 + $0x558] sm:$0xff] %v1192_v33  ;;  %1889 = vst [vmem:[%s2861_s24 + $0x550] sm:$0xff] %v1186_v34 }
 0x18b   : > { %v1204_v35 = vpop.permute.xlu1 %1203  ;;  %v1198_v36 = vpop.permute.xlu0 %1197 }
 0x18c   : > { %1895 = vst [vmem:[%s2861_s24 + $0x568] sm:$0xff] %v1204_v35  ;;  %1893 = vst [vmem:[%s2861_s24 + $0x560] sm:$0xff] %v1198_v36 }
 0x18f   : > { %v1216_v37 = vpop.permute.xlu1 %1215  ;;  %v1210_v38 = vpop.permute.xlu0 %1209 }
 0x190   : > { %1899 = vst [vmem:[%s2861_s24 + $0x578] sm:$0xff] %v1216_v37  ;;  %1897 = vst [vmem:[%s2861_s24 + $0x570] sm:$0xff] %v1210_v38 }
 0x193   : > { %v1228_v39 = vpop.permute.xlu1 %1227  ;;  %v1222_v40 = vpop.permute.xlu0 %1221 }
 0x194   : > { %1903 = vst [vmem:[%s2861_s24 + $0x608] sm:$0xff] %v1228_v39  ;;  %1901 = vst [vmem:[%s2861_s24 + $0x600] sm:$0xff] %v1222_v40 }
 0x197   : > { %v1240_v41 = vpop.permute.xlu1 %1239  ;;  %v1234_v42 = vpop.permute.xlu0 %1233 }
 0x198   : > { %1907 = vst [vmem:[%s2861_s24 + $0x618] sm:$0xff] %v1240_v41  ;;  %1905 = vst [vmem:[%s2861_s24 + $0x610] sm:$0xff] %v1234_v42 }
 0x19b   : > { %v1252_v43 = vpop.permute.xlu1 %1251  ;;  %v1246_v44 = vpop.permute.xlu0 %1245 }
 0x19c   : > { %1911 = vst [vmem:[%s2861_s24 + $0x628] sm:$0xff] %v1252_v43  ;;  %1909 = vst [vmem:[%s2861_s24 + $0x620] sm:$0xff] %v1246_v44 }
 0x19f   : > { %v1264_v45 = vpop.permute.xlu1 %1263  ;;  %v1258_v46 = vpop.permute.xlu0 %1257 }
 0x1a0   : > { %1915 = vst [vmem:[%s2861_s24 + $0x638] sm:$0xff] %v1264_v45  ;;  %1913 = vst [vmem:[%s2861_s24 + $0x630] sm:$0xff] %v1258_v46 }
 0x1a3   : > { %v1276_v47 = vpop.permute.xlu1 %1275  ;;  %v1270_v48 = vpop.permute.xlu0 %1269 }
 0x1a4   : > { %1919 = vst [vmem:[%s2861_s24 + $0x648] sm:$0xff] %v1276_v47  ;;  %1917 = vst [vmem:[%s2861_s24 + $0x640] sm:$0xff] %v1270_v48 }
 0x1a7   : > { %v1288_v49 = vpop.permute.xlu1 %1287  ;;  %v1282_v50 = vpop.permute.xlu0 %1281 }
 0x1a8   : > { %1923 = vst [vmem:[%s2861_s24 + $0x658] sm:$0xff] %v1288_v49  ;;  %1921 = vst [vmem:[%s2861_s24 + $0x650] sm:$0xff] %v1282_v50 }
 0x1ab   : > { %v1300_v51 = vpop.permute.xlu1 %1299  ;;  %v1294_v52 = vpop.permute.xlu0 %1293 }
 0x1ac   : > { %1927 = vst [vmem:[%s2861_s24 + $0x668] sm:$0xff] %v1300_v51  ;;  %1925 = vst [vmem:[%s2861_s24 + $0x660] sm:$0xff] %v1294_v52 }
 0x1af   : > { %v1312_v53 = vpop.permute.xlu1 %1311  ;;  %v1306_v54 = vpop.permute.xlu0 %1305 }
 0x1b0   : > { %1931 = vst [vmem:[%s2861_s24 + $0x678] sm:$0xff] %v1312_v53  ;;  %1929 = vst [vmem:[%s2861_s24 + $0x670] sm:$0xff] %v1306_v54 }
 0x1b3   : > { %v1324_v55 = vpop.permute.xlu1 %1323  ;;  %v1318_v56 = vpop.permute.xlu0 %1317 }
 0x1b4   : > { %1935 = vst [vmem:[%s2861_s24 + $0x708] sm:$0xff] %v1324_v55  ;;  %1933 = vst [vmem:[%s2861_s24 + $0x700] sm:$0xff] %v1318_v56 }
 0x1b7   : > { %v1336_v57 = vpop.permute.xlu1 %1335  ;;  %v1330_v58 = vpop.permute.xlu0 %1329 }
 0x1b8   : > { %1939 = vst [vmem:[%s2861_s24 + $0x718] sm:$0xff] %v1336_v57  ;;  %1937 = vst [vmem:[%s2861_s24 + $0x710] sm:$0xff] %v1330_v58 }
 0x1bb   : > { %v1348_v59 = vpop.permute.xlu1 %1347  ;;  %v1342_v60 = vpop.permute.xlu0 %1341 }
 0x1bc   : > { %1943 = vst [vmem:[%s2861_s24 + $0x728] sm:$0xff] %v1348_v59  ;;  %1941 = vst [vmem:[%s2861_s24 + $0x720] sm:$0xff] %v1342_v60 }
 0x1bf   : > { %v1360_v61 = vpop.permute.xlu1 %1359  ;;  %v1354_v62 = vpop.permute.xlu0 %1353 }
 0x1c0   : > { %1947 = vst [vmem:[%s2861_s24 + $0x738] sm:$0xff] %v1360_v61  ;;  %1945 = vst [vmem:[%s2861_s24 + $0x730] sm:$0xff] %v1354_v62 }
 0x1c3   : > { %v1372_v63 = vpop.permute.xlu1 %1371  ;;  %v1366_v0 = vpop.permute.xlu0 %1365 }
 0x1c4   : > { %1951 = vst [vmem:[%s2861_s24 + $0x748] sm:$0xff] %v1372_v63  ;;  %1949 = vst [vmem:[%s2861_s24 + $0x740] sm:$0xff] %v1366_v0 }
 0x1c7   : > { %v1384_v2 = vpop.permute.xlu1 %1383  ;;  %v1378_v3 = vpop.permute.xlu0 %1377 }
 0x1c8   : > { %1955 = vst [vmem:[%s2861_s24 + $0x758] sm:$0xff] %v1384_v2  ;;  %1953 = vst [vmem:[%s2861_s24 + $0x750] sm:$0xff] %v1378_v3 }
 0x1cb   : > { %v1396_v4 = vpop.permute.xlu1 %1395  ;;  %v1390_v5 = vpop.permute.xlu0 %1389 }
 0x1cc   : > { %1959 = vst [vmem:[%s2861_s24 + $0x768] sm:$0xff] %v1396_v4  ;;  %1957 = vst [vmem:[%s2861_s24 + $0x760] sm:$0xff] %v1390_v5 }
 0x1cf   : > { %v1408_v6 = vpop.permute.xlu1 %1407  ;;  %v1402_v7 = vpop.permute.xlu0 %1401 }
 0x1d0   : > { %1963 = vst [vmem:[%s2861_s24 + $0x778] sm:$0xff] %v1408_v6  ;;  %1961 = vst [vmem:[%s2861_s24 + $0x770] sm:$0xff] %v1402_v7 }
 0x1d1 PF: > { %s10_s8 = sadd.s32 1, %s2486_s8   ;;  %s3066_s6 = smov %s2482_s7 }
 0x1d2   : > { %p7_p5 = scmp.ge.s32.totalorder %s10_s8, 4   ;;  %s3067_s7 = smov %s3069_s10 }
 0x1d4   :  { %9 = sbr.rel (!%p7_p5) target bundleno = 7 (0x7), region = 372 }

</bundles_post_ra>
